<compile_context>
chip_gen: v7x
topology: tpu7x:2x2x1
jax: 0.10.0
libtpu: 0.0.40
codegen_flags: <defaults>
</compile_context>

<pallas_src>
import functools

import jax
import jax.numpy as jnp
from jax.experimental import pallas as pl
from jax.experimental.pallas import tpu as pltpu

FP_DIM = 1489      # MACCS(167) + ErG(441) + PubChem(881)
FP_2_DIM = 512     # args.fp_2_dim (synthetic choice, lane-aligned)
OUT_DIM = 300      # fc2 output


def _round_up(x, m):
    return (x + m - 1) // m * m


def _num_tensorcores():
    """v7x has 2 TensorCores per chip; v5e/v6e have 1."""
    try:
        kind = jax.devices()[0].device_kind.lower()
    except Exception:
        return 1
    return 2 if "v7" in kind else 1


# --------------------------------------------------------------------------- #
# Kernel
# --------------------------------------------------------------------------- #
def fpn_kernel(x_ref, w1_ref, b1_ref, w2_ref, b2_ref, o_ref):
    # Cast x to the weight compute dtype (bf16) right before the MXU pass; the
    # VPU cast is hidden under the x DMA.  No-op if the caller passed bf16 x.
    x = x_ref[...].astype(w1_ref.dtype)
    # fc1: [TB, Kp] @ [Kp, Hp] on the MXU, bf16 operands, f32 accumulation.
    h = jnp.dot(x, w1_ref[...], preferred_element_type=jnp.float32)
    # bias ((1, Hp) row, implicit broadcast) + ReLU in f32; dropout(eval) = identity.
    h = jnp.maximum(h + b1_ref[...], 0.0)
    # fc2: cast activations back to the weight dtype for the second MXU pass.
    out = jnp.dot(h.astype(w2_ref.dtype), w2_ref[...],
                  preferred_element_type=jnp.float32)
    o_ref[...] = (out + b2_ref[...]).astype(o_ref.dtype)


# --------------------------------------------------------------------------- #
# One-time parameter preparation (pad + cast) — call once and reuse.
# --------------------------------------------------------------------------- #
def prepare_params(w1, b1, w2, b2, *, compute_dtype=jnp.bfloat16):
    """Pad to lane/sublane-aligned shapes and cast weights to the compute dtype.

    w1: [1489, H]; b1: [H] or [1, H]; w2: [H, 300]; b2: [300] or [1, 300]
    (weights stored pre-transposed as [in, out]).
    Padded columns/rows are zero, so the math is unchanged.
    """
    K, H = w1.shape
    Hw, N = w2.shape
    assert H == Hw, "fc1 output dim must match fc2 input dim"

    K_pad = _round_up(K, 128)   # 1489 -> 1536
    H_pad = _round_up(H, 128)
    N_pad = _round_up(N, 128)   # 300  -> 384 (lane-dense output store)

    cd = compute_dtype
    w1p = jnp.zeros((K_pad, H_pad), cd).at[:K, :H].set(w1.astype(cd))
    w2p = jnp.zeros((H_pad, N_pad), cd).at[:H, :N].set(w2.astype(cd))
    b1p = jnp.zeros((1, H_pad), jnp.float32).at[:, :H].set(
        jnp.reshape(b1, (1, H)).astype(jnp.float32))
    b2p = jnp.zeros((1, N_pad), jnp.float32).at[:, :N].set(
        jnp.reshape(b2, (1, N)).astype(jnp.float32))

    # n_in / n_out kept as Python ints (static metadata, not pytree leaves).
    return {"w1": w1p, "b1": b1p, "w2": w2p, "b2": b2p, "n_in": K, "n_out": N}


# --------------------------------------------------------------------------- #
# Batch tiling: big tiles, tiny-batch collapse, v7x 2-core split, shape buckets.
# --------------------------------------------------------------------------- #
def _batch_tiling(B, tile_b=None, bucket_batch=True):
    if tile_b is None:
        tile_b = 512   # ~85% of HBM roofline per measured tiling data; VMEM-trivial.
    B8 = _round_up(B, 8)
    tb = min(tile_b, B8)
    # v7x: if a large-enough batch would fit in a single tile, split it in two so
    # dimension_semantics=("parallel",) shards the grid across both TensorCores.
    if _num_tensorcores() > 1 and 8 < B8 <= tb:
        tb = _round_up(B8 // 2, 8)
    n_steps = pl.cdiv(B8, tb)
    if bucket_batch:
        # Bucket to a power-of-two number of grid steps to bound recompiles in
        # variable-batch serving (padded rows are zero and sliced off).
        n_steps = 1 << (n_steps - 1).bit_length()
    return tb, n_steps * tb


# --------------------------------------------------------------------------- #
# Cached, jitted end-to-end forward (pad x -> pallas_call -> slice).
# --------------------------------------------------------------------------- #
@functools.lru_cache(maxsize=None)
def _fpn_fn(B, K, N, tb, B_pad, K_pad, H_pad, N_pad, out_dtype_name):
    out_dtype = jnp.dtype(out_dtype_name)

    in_specs = [
        pl.BlockSpec((tb, K_pad), lambda i: (i, 0)),        # x: tiled over batch
        pl.BlockSpec((K_pad, H_pad), lambda i: (0, 0)),     # W1: resident
        pl.BlockSpec((1, H_pad), lambda i: (0, 0)),         # b1: resident
        pl.BlockSpec((H_pad, N_pad), lambda i: (0, 0)),     # W2: resident
        pl.BlockSpec((1, N_pad), lambda i: (0, 0)),         # b2: resident
    ]
    out_specs = pl.BlockSpec((tb, N_pad), lambda i: (i, 0)) # lane-dense (Np % 128 == 0)

    call = pl.pallas_call(
        fpn_kernel,
        out_shape=jax.ShapeDtypeStruct((B_pad, N_pad), out_dtype),
        grid_spec=pltpu.PrefetchScalarGridSpec(
            num_scalar_prefetch=0,
            grid=(B_pad // tb,),
            in_specs=in_specs,
            out_specs=out_specs,
        ),
        compiler_params=pltpu.CompilerParams(
            dimension_semantics=("parallel",),   # shard batch tiles across TCs (v7x)
        ),
    )

    def fwd(x, w1p, b1p, w2p, b2p):
        # Single zero-pad of x in its own dtype (batch rows + K tail); the bf16
        # cast happens inside the kernel.  No-op if already padded.
        if (B, K) != (B_pad, K_pad):
            xp = jnp.zeros((B_pad, K_pad), x.dtype).at[:B, :K].set(x)
        else:
            xp = x
        out = call(xp, w1p, b1p, w2p, b2p)
        return out[:B, :N]

    return jax.jit(fwd)


def fpn_forward(x, params, *, tile_b=None, out_dtype=jnp.float32, bucket_batch=True):
    """x: [B, 1489] (f32 or bf16); params: output of prepare_params()."""
    B, K = x.shape
    K_pad, H_pad = params["w1"].shape
    _, N_pad = params["w2"].shape
    N = params["n_out"]
    assert K == params["n_in"], "x feature dim must match fc1 input dim"

    tb, B_pad = _batch_tiling(B, tile_b, bucket_batch)
    fn = _fpn_fn(B, K, N, tb, B_pad, K_pad, H_pad, N_pad, jnp.dtype(out_dtype).name)
    return fn(x, params["w1"], params["b1"], params["w2"], params["b2"])


# --------------------------------------------------------------------------- #
# Pure-JAX reference
# --------------------------------------------------------------------------- #
def reference_forward(x, w1, b1, w2, b2, *, compute_dtype=jnp.float32):
    """Pure-JAX reference.  compute_dtype mimics the kernel's operand casts."""
    cd = compute_dtype
    f32 = jnp.float32
    xf = x.astype(cd).astype(f32)
    w1f = w1.astype(cd).astype(f32)
    w2f = w2.astype(cd).astype(f32)
    b1f = jnp.reshape(b1, (1, -1)).astype(f32)
    b2f = jnp.reshape(b2, (1, -1)).astype(f32)
    h = jnp.maximum(xf @ w1f + b1f, 0.0)
    h = h.astype(cd).astype(f32)
    return h @ w2f + b2f


if __name__ == "__main__":
    key = jax.random.PRNGKey(0)
    k_x, k_w1, k_b1, k_w2, k_b2 = jax.random.split(key, 5)

    batch = 10  # deliberately NOT a multiple of 8/128 to exercise batch padding

    # Synthetic fingerprint input [batch, 1489] (binary-ish / float ErG part — math
    # is identical with random floats).
    x = jax.random.uniform(k_x, (batch, FP_DIM), dtype=jnp.float32)

    # Deterministic Linear-like parameters, stored pre-transposed as [in, out].
    w1 = jax.random.normal(k_w1, (FP_DIM, FP_2_DIM), dtype=jnp.float32) * (1.0 / jnp.sqrt(FP_DIM))
    b1 = jax.random.normal(k_b1, (FP_2_DIM,), dtype=jnp.float32) * 0.01
    w2 = jax.random.normal(k_w2, (FP_2_DIM, OUT_DIM), dtype=jnp.float32) * (1.0 / jnp.sqrt(FP_2_DIM))
    b2 = jax.random.normal(k_b2, (OUT_DIM,), dtype=jnp.float32) * 0.01

    # One-time weight padding/casting; reused across every forward call.
    params = prepare_params(w1, b1, w2, b2)

    out = fpn_forward(x, params)
    out = jax.block_until_ready(out)
    assert out.shape == (batch, OUT_DIM)

    # Second call reuses the cached compiled function (no re-pad of weights).
    out2 = jax.block_until_ready(fpn_forward(x, params))
    assert jnp.array_equal(out, out2)

    # Cast-matched reference (same bf16 operand rounding, f32 accumulation).
    ref_bf16 = reference_forward(x, w1, b1, w2, b2, compute_dtype=jnp.bfloat16)
    # Full-f32 reference (loose tolerance: bf16 operand rounding only).
    ref_f32 = reference_forward(x, w1, b1, w2, b2, compute_dtype=jnp.float32)

    assert jnp.allclose(out, ref_bf16, atol=1e-2, rtol=1e-2)
    assert jnp.allclose(out, ref_f32, atol=5e-2, rtol=5e-2)

    print("KERNEL_OK")
</pallas_src>

<mosaic_0001>
module attributes {stable_mosaic.version = 11 : i64} {
  func.func @fpn_kernel(%arg0: i32, %arg1: memref<16x1536xf32, #tpu.memory_space<vmem>>, %arg2: memref<1536x512xbf16, #tpu.memory_space<vmem>>, %arg3: memref<1x512xf32, #tpu.memory_space<vmem>>, %arg4: memref<512x384xbf16, #tpu.memory_space<vmem>>, %arg5: memref<1x384xf32, #tpu.memory_space<vmem>>, %arg6: memref<16x384xf32, #tpu.memory_space<vmem>>) attributes {dimension_semantics = [#tpu.dimension_semantics<parallel>], iteration_bounds = array<i64: 1>, scalar_prefetch = 0 : i64, scratch_operands = 0 : i64, tpu.core_type = #tpu.core_type<tc>, window_params = [{transform_indices = @transform_0, window_bounds = array<i64: 16, 1536>}, {pipeline_mode = #tpu.pipeline_mode<synchronous>, transform_indices = @transform_1, window_bounds = array<i64: 1536, 512>}, {pipeline_mode = #tpu.pipeline_mode<synchronous>, transform_indices = @transform_2, window_bounds = array<i64: 1, 512>}, {pipeline_mode = #tpu.pipeline_mode<synchronous>, transform_indices = @transform_3, window_bounds = array<i64: 512, 384>}, {pipeline_mode = #tpu.pipeline_mode<synchronous>, transform_indices = @transform_4, window_bounds = array<i64: 1, 384>}, {transform_indices = @transform_5, window_bounds = array<i64: 16, 384>}]} {
    %c0 = arith.constant 0 : index
    %c0_0 = arith.constant 0 : index
    %0 = vector.load %arg1[%c0, %c0_0] : memref<16x1536xf32, #tpu.memory_space<vmem>>, vector<16x1536xf32>
    %1 = arith.truncf %0 : vector<16x1536xf32> to vector<16x1536xbf16>
    %c0_1 = arith.constant 0 : index
    %c0_2 = arith.constant 0 : index
    %2 = vector.load %arg2[%c0_1, %c0_2] : memref<1536x512xbf16, #tpu.memory_space<vmem>>, vector<1536x512xbf16>
    %cst = arith.constant dense<0.000000e+00> : vector<16x512xf32>
    %3 = tpu.matmul %1, %2, %cst {dimension_numbers = #tpu.dot_dimension_numbers<[1], [0], [0], [1], [0, 0, 1, 1], [], []>} : vector<16x1536xbf16>, vector<1536x512xbf16>, vector<16x512xf32> -> vector<16x512xf32>
    %c0_3 = arith.constant 0 : index
    %c0_4 = arith.constant 0 : index
    %4 = vector.load %arg3[%c0_3, %c0_4] : memref<1x512xf32, #tpu.memory_space<vmem>>, vector<1x512xf32>
    %5 = vector.broadcast %4 : vector<1x512xf32> to vector<16x512xf32>
    %6 = arith.addf %3, %5 : vector<16x512xf32>
    %cst_5 = arith.constant 0.000000e+00 : f32
    %7 = vector.broadcast %cst_5 : f32 to vector<16x512xf32>
    %8 = arith.maximumf %6, %7 : vector<16x512xf32>
    %9 = arith.truncf %8 : vector<16x512xf32> to vector<16x512xbf16>
    %c0_6 = arith.constant 0 : index
    %c0_7 = arith.constant 0 : index
    %10 = vector.load %arg4[%c0_6, %c0_7] : memref<512x384xbf16, #tpu.memory_space<vmem>>, vector<512x384xbf16>
    %cst_8 = arith.constant dense<0.000000e+00> : vector<16x384xf32>
    %11 = tpu.matmul %9, %10, %cst_8 {dimension_numbers = #tpu.dot_dimension_numbers<[1], [0], [0], [1], [0, 0, 1, 1], [], []>} : vector<16x512xbf16>, vector<512x384xbf16>, vector<16x384xf32> -> vector<16x384xf32>
    %c0_9 = arith.constant 0 : index
    %c0_10 = arith.constant 0 : index
    %12 = vector.load %arg5[%c0_9, %c0_10] : memref<1x384xf32, #tpu.memory_space<vmem>>, vector<1x384xf32>
    %13 = vector.broadcast %12 : vector<1x384xf32> to vector<16x384xf32>
    %14 = arith.addf %11, %13 : vector<16x384xf32>
    %c0_11 = arith.constant 0 : index
    %c0_12 = arith.constant 0 : index
    %15 = vector.load %arg6[%c0_11, %c0_12] : memref<16x384xf32, #tpu.memory_space<vmem>>, vector<16x384xf32>
    tpu.vector_store %arg6[%c0_11, %c0_12], %14 {strides = array<i32>} : memref<16x384xf32, #tpu.memory_space<vmem>>, vector<16x384xf32>,
    return
  }
  func.func @transform_0(%arg0: i32) -> (i32, i32) {
    %c0_i32 = arith.constant 0 : i32
    %c0_i32_0 = arith.constant 0 : i32
    return %arg0, %c0_i32 : i32, i32
  }
  func.func @transform_1(%arg0: i32) -> (i32, i32) {
    %c0_i32 = arith.constant 0 : i32
    %c0_i32_0 = arith.constant 0 : i32
    %c0_i32_1 = arith.constant 0 : i32
    return %c0_i32, %c0_i32_0 : i32, i32
  }
  func.func @transform_2(%arg0: i32) -> (i32, i32) {
    %c0_i32 = arith.constant 0 : i32
    %c0_i32_0 = arith.constant 0 : i32
    %c0_i32_1 = arith.constant 0 : i32
    return %c0_i32, %c0_i32_0 : i32, i32
  }
  func.func @transform_3(%arg0: i32) -> (i32, i32) {
    %c0_i32 = arith.constant 0 : i32
    %c0_i32_0 = arith.constant 0 : i32
    %c0_i32_1 = arith.constant 0 : i32
    return %c0_i32, %c0_i32_0 : i32, i32
  }
  func.func @transform_4(%arg0: i32) -> (i32, i32) {
    %c0_i32 = arith.constant 0 : i32
    %c0_i32_0 = arith.constant 0 : i32
    %c0_i32_1 = arith.constant 0 : i32
    return %c0_i32, %c0_i32_0 : i32, i32
  }
  func.func @transform_5(%arg0: i32) -> (i32, i32) {
    %c0_i32 = arith.constant 0 : i32
    %c0_i32_0 = arith.constant 0 : i32
    return %arg0, %c0_i32 : i32, i32
  }
}

</mosaic_0001>

<bundles_post_ra>
// kernel: fwd.1
= control target key start
LH: loop header
LB: loop body
LE: loop exit
PB: predicated region body
PF: predicated region fallthrough
CT: control target
= control target key end

     0   :  { %10 = vsyncpa [#allocation3], 0  ;;  %s5428_s0 = inlined_call_operand.vmem [shape: f32[16,1536], index: 0, kind: input, shape index: {}]   ;;  %s5429_s1 = inlined_call_operand.hbm [shape: bf16[1536,512], index: 1, kind: input, shape index: {}]   ;;  %s5430_s2 = inlined_call_operand.hbm [shape: f32[1,512], index: 2, kind: input, shape index: {}]   ;;  %s5431_s3 = inlined_call_operand.hbm [shape: bf16[512,384], index: 3, kind: input, shape index: {}]   ;;  %s5432_s4 = inlined_call_operand.hbm [shape: f32[1,384], index: 4, kind: input, shape index: {}]   ;;  %s5433_s5 = inlined_call_operand.hbm [shape: f32[16,384], index: 5, kind: output, shape index: {}]  }
   0x1   :  { %11 = vsyncpa [#allocation6], 0 }
   0x2   :  { %12 = vsyncpa [#allocation9], 0 }
   0x3   :  { %13 = vsyncpa [#allocation4], 0  ;;  %s5226_s18 = smov [#allocation5]   ;;  %s5227_s20 = smov [#allocation2]  }
   0x4   :  { %s34_s19 = sshll.u32 %s5226_s18, 4  ;;  %s21_s21 = sshll.u32 %s5227_s20, 4  ;;  %s35_s19 = int_to_ptr.vmem [resolvable:$true] %s34_s19  ;;  %s5267_s21 = int_to_ptr.vmem [resolvable:$true] %s21_s21 }
   0x5   :  { %s5108_s24 = scalar_lea.hbm %s5430_s2, 64 }
   0x6   :  { %p5109_p0 = scmp.ne.s32.totalorder %s5430_s2, %s5108_s24  ;;  %p5112_p1 = scmp.lt.u32.totalorder %s5108_s24, %s5430_s2 }
   0x8   :  { %p5114_p2 = pnand %p5112_p1, %p5109_p0 }
   0xa   :  { %5117 = shalt.err (!%p5114_p2)
}
   0xb   :  { %s5118_s29 = scalar_lea.vmem %s35_s19, 64  ;;  %p5123_p4 = scmp.lt.s32.totalorder %s35_s19, %s35_s19 }
   0xc   :  { %p5119_p3 = scmp.ne.s32.totalorder %s35_s19, %s5118_s29  ;;  %p5124_p5 = scmp.lt.s32.totalorder %s5118_s29, %s5118_s29 }
   0xe   :  { %p5125_p6 = por %p5124_p5, %p5123_p4 }
  0x10   :  { %p5126_p7 = pnand %p5125_p6, %p5119_p3 }
  0x12   :  { %5129 = shalt.err (!%p5126_p7)
}
  0x13   :  { %37 = dma.hbm_to_vmem [thread:$0]  %s5430_s2, 64, %s35_s19, [#allocation6]  }
  0x14   :  { %s5130_s9 = scalar_lea.hbm %s5429_s1, 49152 }
  0x15   :  { %p5131_p8 = scmp.ne.s32.totalorder %s5429_s1, %s5130_s9  ;;  %p5134_p9 = scmp.lt.u32.totalorder %s5130_s9, %s5429_s1 }
  0x17   :  { %p5136_p10 = pnand %p5134_p9, %p5131_p8 }
  0x19   :  { %5139 = shalt.err (!%p5136_p10)
}
  0x1a   :  { %s5140_s14 = scalar_lea.vmem %s5267_s21, 49152  ;;  %p5145_p12 = scmp.lt.s32.totalorder %s5267_s21, %s5267_s21 }
  0x1b   :  { %p5141_p11 = scmp.ne.s32.totalorder %s5267_s21, %s5140_s14  ;;  %p5146_p13 = scmp.lt.s32.totalorder %s5140_s14, %s5140_s14 }
  0x1d   :  { %p5147_p0 = por %p5146_p13, %p5145_p12 }
  0x1f   :  { %p5148_p1 = pnand %p5147_p0, %p5141_p11 }
  0x21   :  { %5151 = shalt.err (!%p5148_p1)
}
  0x22   :  { %s5228_s2 = smov 256   ;;  %s5229_s15 = smov 16  }
  0x23   :  { %27 = dma.hbm_to_vmem [thread:$0]  %s5429_s1, 49152, %s5267_s21, [#allocation3], %s5228_s2, %s5228_s2, %s5229_s15  }
  0x24   :  { %s5230_s18 = smov [#allocation7]   ;;  %s5152_s23 = scalar_lea.hbm %s5431_s3, 12288 }
  0x25   :  { %s43_s19 = sshll.u32 %s5230_s18, 4  ;;  %p5153_p2 = scmp.ne.s32.totalorder %s5431_s3, %s5152_s23  ;;  %s44_s19 = int_to_ptr.vmem [resolvable:$true] %s43_s19 }
  0x26   :  { %p5156_p3 = scmp.lt.u32.totalorder %s5152_s23, %s5431_s3 }
  0x28   :  { %p5158_p4 = pnand %p5156_p3, %p5153_p2 }
  0x2a   :  { %5161 = shalt.err (!%p5158_p4)
}
  0x2b   :  { %s5162_s28 = scalar_lea.vmem %s44_s19, 12288  ;;  %p5167_p6 = scmp.lt.s32.totalorder %s44_s19, %s44_s19 }
  0x2c   :  { %p5163_p5 = scmp.ne.s32.totalorder %s44_s19, %s5162_s28  ;;  %p5168_p7 = scmp.lt.s32.totalorder %s5162_s28, %s5162_s28 }
  0x2e   :  { %p5169_p8 = por %p5168_p7, %p5167_p6 }
  0x30   :  { %p5170_p9 = pnand %p5169_p8, %p5163_p5 }
  0x32   :  { %5173 = shalt.err (!%p5170_p9)
}
  0x33   :  { %s5231_s1 = smov 192   ;;  %s5232_s21 = smov 12  }
  0x34   :  { %49 = dma.hbm_to_vmem [thread:$0]  %s5431_s3, 12288, %s44_s19, [#allocation6], %s5231_s1, %s5231_s1, %s5232_s21  }
  0x35   :  { %s5233_s6 = smov [#allocation8]   ;;  %s5174_s10 = scalar_lea.hbm %s5432_s4, 48 }
  0x36   :  { %s56_s7 = sshll.u32 %s5233_s6, 4  ;;  %p5175_p10 = scmp.ne.s32.totalorder %s5432_s4, %s5174_s10  ;;  %s57_s7 = int_to_ptr.vmem [resolvable:$true] %s56_s7 }
  0x37   :  { %p5178_p11 = scmp.lt.u32.totalorder %s5174_s10, %s5432_s4 }
  0x39   :  { %p5180_p12 = pnand %p5178_p11, %p5175_p10 }
  0x3b   :  { %5183 = shalt.err (!%p5180_p12)
}
  0x3c   :  { %s5184_s2 = scalar_lea.vmem %s57_s7, 48  ;;  %s5188_s3 = scalar_lea.vmem %s57_s7, 64 }
  0x3d   :  { %p5185_p13 = scmp.ne.s32.totalorder %s57_s7, %s5184_s2  ;;  %p5189_p0 = scmp.lt.s32.totalorder %s57_s7, %s57_s7 }
  0x3e   :  { %p5190_p1 = scmp.lt.s32.totalorder %s5188_s3, %s5184_s2 }
  0x40   :  { %p5191_p2 = por %p5190_p1, %p5189_p0 }
  0x42   :  { %p5192_p3 = pnand %p5191_p2, %p5185_p13 }
  0x44   :  { %5195 = shalt.err (!%p5192_p3)
}
  0x45   :  { %59 = dma.hbm_to_vmem [thread:$0]  %s5432_s4, 48, %s57_s7, [#allocation9]  }
  0x46   :  { %5218 = dma.done.wait [#allocation3], 49152  }
  0x47   :  { %5219 = vsyncadd [#allocation3], 4294918144 }
  0x48   :  { %5220 = dma.done.wait [#allocation6], 12352  }
  0x49   :  { %5221 = vsyncadd [#allocation6], 4294954944 }
  0x4a   :  { %5222 = dma.done.wait [#allocation9], 48  }
  0x4b   :  { %5223 = vsyncadd [#allocation9], 4294967248  ;;  %v4404_v0 = vld [vmem:[#allocation2 + $0x4] ss:$16 sps:$4 sm:$0xff]   ;;  %v4406_v1 = vld [vmem:[#allocation2 + $0xc] ss:$16 sps:$4 sm:$0xff]  }
  0x4c   :  { %2435 = vmatprep.subr.bf16.mxu0 %v4404_v0  ;;  %v4408_v2 = vld [vmem:[#allocation2] ss:$16 sps:$4 sm:$0xff]   ;;  %v4409_v3 = vld [vmem:[#allocation2 + $0x8] ss:$16 sps:$4 sm:$0xff]   ;;  %2693 = vmatprep.subr.bf16.mxu1 %v4406_v1  ;;  %v4410_v4 = vld [vmem:[#allocation2 + $0x24] ss:$16 sps:$4 sm:$0xff]  }
  0x4d   :  { %2436 = vmatpush1.bf16.msra.mxu0 %v4408_v2  ;;  %2694 = vmatpush1.bf16.msra.mxu1 %v4409_v3  ;;  %v4412_v5 = vld [vmem:[#allocation2 + $0x2c] ss:$16 sps:$4 sm:$0xff]   ;;  %v4414_v6 = vld [vmem:[#allocation2 + $0x20] ss:$16 sps:$4 sm:$0xff]   ;;  %v4415_v7 = vld [vmem:[#allocation2 + $0x28] ss:$16 sps:$4 sm:$0xff]  }
  0x4e   :  { %2437 = vmatprep.subr.bf16.mxu0 %v4410_v4  ;;  %2695 = vmatprep.subr.bf16.mxu1 %v4412_v5  ;;  %v4416_v8 = vld [vmem:[#allocation2 + $0x44] ss:$16 sps:$4 sm:$0xff]   ;;  %v4418_v9 = vld [vmem:[#allocation2 + $0x4c] ss:$16 sps:$4 sm:$0xff]   ;;  %v4420_v10 = vld [vmem:[#allocation2 + $0x40] ss:$16 sps:$4 sm:$0xff]  }
  0x4f   :  { %v4421_v11 = vld [vmem:[#allocation2 + $0x48] ss:$16 sps:$4 sm:$0xff]   ;;  %v4422_v12 = vld [vmem:[#allocation2 + $0x64] ss:$16 sps:$4 sm:$0xff]   ;;  %v4424_v13 = vld [vmem:[#allocation2 + $0x6c] ss:$16 sps:$4 sm:$0xff]  }
  0x50   :  { %v4426_v14 = vld [vmem:[#allocation2 + $0x60] ss:$16 sps:$4 sm:$0xff]   ;;  %v4427_v15 = vld [vmem:[#allocation2 + $0x68] ss:$16 sps:$4 sm:$0xff]   ;;  %v4428_v16 = vld [vmem:[#allocation2 + $0x84] ss:$16 sps:$4 sm:$0xff]  }
  0x51   :  { %2438 = vmatpush1.bf16.msra.mxu0 %v4414_v6  ;;  %2696 = vmatpush1.bf16.msra.mxu1 %v4415_v7  ;;  %v4430_v17 = vld [vmem:[#allocation2 + $0x8c] ss:$16 sps:$4 sm:$0xff]   ;;  %v4432_v18 = vld [vmem:[#allocation2 + $0x80] ss:$16 sps:$4 sm:$0xff]   ;;  %v4433_v19 = vld [vmem:[#allocation2 + $0x88] ss:$16 sps:$4 sm:$0xff]  }
  0x52   :  { %2439 = vmatprep.subr.bf16.mxu0 %v4416_v8  ;;  %2697 = vmatprep.subr.bf16.mxu1 %v4418_v9  ;;  %v4434_v20 = vld [vmem:[#allocation2 + $0xa4] ss:$16 sps:$4 sm:$0xff]   ;;  %v4436_v21 = vld [vmem:[#allocation2 + $0xac] ss:$16 sps:$4 sm:$0xff]   ;;  %v4438_v22 = vld [vmem:[#allocation2 + $0xa0] ss:$16 sps:$4 sm:$0xff]  }
  0x53   :  { %v4439_v23 = vld [vmem:[#allocation2 + $0xa8] ss:$16 sps:$4 sm:$0xff]   ;;  %v4440_v24 = vld [vmem:[#allocation2 + $0xc4] ss:$16 sps:$4 sm:$0xff]   ;;  %v4442_v25 = vld [vmem:[#allocation2 + $0xcc] ss:$16 sps:$4 sm:$0xff]  }
  0x54   :  { %v4444_v26 = vld [vmem:[#allocation2 + $0xc0] ss:$16 sps:$4 sm:$0xff]   ;;  %v4445_v27 = vld [vmem:[#allocation2 + $0xc8] ss:$16 sps:$4 sm:$0xff]   ;;  %v4446_v28 = vld [vmem:[#allocation2 + $0xe4] ss:$16 sps:$4 sm:$0xff]  }
  0x55   :  { %2440 = vmatpush1.bf16.msra.mxu0 %v4420_v10  ;;  %2698 = vmatpush1.bf16.msra.mxu1 %v4421_v11  ;;  %v4448_v29 = vld [vmem:[#allocation2 + $0xec] ss:$16 sps:$4 sm:$0xff]   ;;  %v4450_v30 = vld [vmem:[#allocation2 + $0xe0] ss:$16 sps:$4 sm:$0xff]   ;;  %v4451_v31 = vld [vmem:[#allocation2 + $0xe8] ss:$16 sps:$4 sm:$0xff]  }
  0x56   :  { %2441 = vmatprep.subr.bf16.mxu0 %v4422_v12  ;;  %2699 = vmatprep.subr.bf16.mxu1 %v4424_v13  ;;  %v4452_v32 = vld [vmem:[#allocation2 + $0x104] ss:$16 sps:$4 sm:$0xff]   ;;  %v4454_v33 = vld [vmem:[#allocation2 + $0x10c] ss:$16 sps:$4 sm:$0xff]   ;;  %v4456_v34 = vld [vmem:[#allocation2 + $0x100] ss:$16 sps:$4 sm:$0xff]  }
  0x57   :  { %v4457_v35 = vld [vmem:[#allocation2 + $0x108] ss:$16 sps:$4 sm:$0xff]   ;;  %v4458_v36 = vld [vmem:[#allocation2 + $0x124] ss:$16 sps:$4 sm:$0xff]   ;;  %v4460_v37 = vld [vmem:[#allocation2 + $0x12c] ss:$16 sps:$4 sm:$0xff]  }
  0x58   :  { %v4462_v38 = vld [vmem:[#allocation2 + $0x120] ss:$16 sps:$4 sm:$0xff]   ;;  %v4463_v39 = vld [vmem:[#allocation2 + $0x128] ss:$16 sps:$4 sm:$0xff]   ;;  %v4464_v40 = vld [vmem:[#allocation2 + $0x144] ss:$16 sps:$4 sm:$0xff]  }
  0x59   :  { %2442 = vmatpush1.bf16.msra.mxu0 %v4426_v14  ;;  %2700 = vmatpush1.bf16.msra.mxu1 %v4427_v15  ;;  %v4466_v41 = vld [vmem:[#allocation2 + $0x14c] ss:$16 sps:$4 sm:$0xff]   ;;  %v4468_v42 = vld [vmem:[#allocation2 + $0x140] ss:$16 sps:$4 sm:$0xff]   ;;  %v4469_v43 = vld [vmem:[#allocation2 + $0x148] ss:$16 sps:$4 sm:$0xff]  }
  0x5a   :  { %2443 = vmatprep.subr.bf16.mxu0 %v4428_v16  ;;  %2701 = vmatprep.subr.bf16.mxu1 %v4430_v17  ;;  %v4470_v44 = vld [vmem:[#allocation2 + $0x164] ss:$16 sps:$4 sm:$0xff]   ;;  %v4472_v45 = vld [vmem:[#allocation2 + $0x16c] ss:$16 sps:$4 sm:$0xff]   ;;  %v4474_v48 = vld [vmem:[#allocation2 + $0x160] ss:$16 sps:$4 sm:$0xff]  }
  0x5b   :  { %v74_v46 = vld [vmem:[%s5428_s0 + $0x8] sm:$0xff]  ;;  %v4476_v51 = vld [vmem:[#allocation2 + $0x184] ss:$16 sps:$4 sm:$0xff]   ;;  %v4480_v53 = vld [vmem:[#allocation2 + $0x180] ss:$16 sps:$4 sm:$0xff]  }
  0x5c   :  { %v86_v47 = vld [vmem:[%s5428_s0 + $0x68] sm:$0xff]  ;;  %v4482_v55 = vld [vmem:[#allocation2 + $0x1a4] ss:$16 sps:$4 sm:$0xff]   ;;  %v4486_v57 = vld [vmem:[#allocation2 + $0x1a0] ss:$16 sps:$4 sm:$0xff]  }
  0x5d   :  { %2444 = vmatpush1.bf16.msra.mxu0 %v4432_v18  ;;  %2702 = vmatpush1.bf16.msra.mxu1 %v4433_v19  ;;  %v4475_v49 = vld [vmem:[#allocation2 + $0x168] ss:$16 sps:$4 sm:$0xff]   ;;  %v98_v50 = vpack.c.bf16 %v86_v47, %v74_v46  ;;  %v4478_v52 = vld [vmem:[#allocation2 + $0x18c] ss:$16 sps:$4 sm:$0xff]   ;;  %v4488_v59 = vld [vmem:[#allocation2 + $0x1c4] ss:$16 sps:$4 sm:$0xff]  }
  0x5e   :  { %2445 = vmatprep.subr.bf16.mxu0 %v4434_v20  ;;  %2703 = vmatprep.subr.bf16.mxu1 %v4436_v21  ;;  %v4481_v54 = vld [vmem:[#allocation2 + $0x188] ss:$16 sps:$4 sm:$0xff]   ;;  %v4484_v56 = vld [vmem:[#allocation2 + $0x1ac] ss:$16 sps:$4 sm:$0xff]   ;;  %v4492_v61 = vld [vmem:[#allocation2 + $0x1c0] ss:$16 sps:$4 sm:$0xff]  }
  0x5f   :  { %2467 = vmatprep.mubr.bf16.mxu0 %v98_v50  ;;  %2725 = vmatprep.mubr.bf16.mxu1 %v98_v50  ;;  %v4487_v58 = vld [vmem:[#allocation2 + $0x1a8] ss:$16 sps:$4 sm:$0xff]   ;;  %v4490_v60 = vld [vmem:[#allocation2 + $0x1cc] ss:$16 sps:$4 sm:$0xff]   ;;  %v4494_v63 = vld [vmem:[#allocation2 + $0x1e4] ss:$16 sps:$4 sm:$0xff]  }
  0x60   :  { %v4493_v62 = vld [vmem:[#allocation2 + $0x1c8] ss:$16 sps:$4 sm:$0xff]   ;;  %v4496_v0 = vld [vmem:[#allocation2 + $0x1ec] ss:$16 sps:$4 sm:$0xff]   ;;  %v4498_v1 = vld [vmem:[#allocation2 + $0x1e0] ss:$16 sps:$4 sm:$0xff]  }
  0x61   :  { %2446 = vmatpush1.bf16.msra.mxu0 %v4438_v22  ;;  %2704 = vmatpush1.bf16.msra.mxu1 %v4439_v23  ;;  %v4499_v2 = vld [vmem:[#allocation2 + $0x1e8] ss:$16 sps:$4 sm:$0xff]   ;;  %v4502_v3 = vld [vmem:[#allocation2 + $0x204] ss:$16 sps:$4 sm:$0xff]   ;;  %v4505_v6 = vld [vmem:[#allocation2 + $0x20c] ss:$16 sps:$4 sm:$0xff]  }
  0x62   :  { %2447 = vmatprep.subr.bf16.mxu0 %v4440_v24  ;;  %2705 = vmatprep.subr.bf16.mxu1 %v4442_v25  ;;  %v73_v4 = vld [vmem:[%s5428_s0] sm:$0xff]  ;;  %v4503_v8 = vld [vmem:[#allocation2 + $0x208] ss:$16 sps:$4 sm:$0xff]   ;;  %v4511_v11 = vld [vmem:[#allocation2 + $0x22c] ss:$16 sps:$4 sm:$0xff]  }
  0x63   :  { %v85_v5 = vld [vmem:[%s5428_s0 + $0x60] sm:$0xff]  ;;  %v4509_v13 = vld [vmem:[#allocation2 + $0x228] ss:$16 sps:$4 sm:$0xff]   ;;  %v4517_v15 = vld [vmem:[#allocation2 + $0x24c] ss:$16 sps:$4 sm:$0xff]  }
  0x64   :  { %v4500_v7 = vld [vmem:[#allocation2 + $0x200] ss:$16 sps:$4 sm:$0xff]   ;;  %v97_v9 = vpack.c.bf16 %v85_v5, %v73_v4  ;;  %v4508_v10 = vld [vmem:[#allocation2 + $0x224] ss:$16 sps:$4 sm:$0xff]   ;;  %v4515_v17 = vld [vmem:[#allocation2 + $0x248] ss:$16 sps:$4 sm:$0xff]  }
  0x65   :  { %2448 = vmatpush1.bf16.msra.mxu0 %v4444_v26  ;;  %2706 = vmatpush1.bf16.msra.mxu1 %v4445_v27  ;;  %v4506_v12 = vld [vmem:[#allocation2 + $0x220] ss:$16 sps:$4 sm:$0xff]   ;;  %v4514_v14 = vld [vmem:[#allocation2 + $0x244] ss:$16 sps:$4 sm:$0xff]   ;;  %v4523_v19 = vld [vmem:[#allocation2 + $0x26c] ss:$16 sps:$4 sm:$0xff]  }
  0x66   :  { %2449 = vmatprep.subr.bf16.mxu0 %v4446_v28  ;;  %2707 = vmatprep.subr.bf16.mxu1 %v4448_v29  ;;  %v4512_v16 = vld [vmem:[#allocation2 + $0x240] ss:$16 sps:$4 sm:$0xff]   ;;  %v4520_v18 = vld [vmem:[#allocation2 + $0x264] ss:$16 sps:$4 sm:$0xff]   ;;  %v4521_v21 = vld [vmem:[#allocation2 + $0x268] ss:$16 sps:$4 sm:$0xff]  }
  0x67   :  { %v4518_v20 = vld [vmem:[#allocation2 + $0x260] ss:$16 sps:$4 sm:$0xff]   ;;  %v4526_v22 = vld [vmem:[#allocation2 + $0x284] ss:$16 sps:$4 sm:$0xff]   ;;  %v4529_v23 = vld [vmem:[#allocation2 + $0x28c] ss:$16 sps:$4 sm:$0xff]  }
  0x68   :  { %v4524_v24 = vld [vmem:[#allocation2 + $0x280] ss:$16 sps:$4 sm:$0xff]   ;;  %v4527_v25 = vld [vmem:[#allocation2 + $0x288] ss:$16 sps:$4 sm:$0xff]   ;;  %v4532_v26 = vld [vmem:[#allocation2 + $0x2a4] ss:$16 sps:$4 sm:$0xff]  }
  0x69   :  { %2450 = vmatpush1.bf16.msra.mxu0 %v4450_v30  ;;  %2708 = vmatpush1.bf16.msra.mxu1 %v4451_v31  ;;  %v4535_v27 = vld [vmem:[#allocation2 + $0x2ac] ss:$16 sps:$4 sm:$0xff]   ;;  %v4530_v28 = vld [vmem:[#allocation2 + $0x2a0] ss:$16 sps:$4 sm:$0xff]   ;;  %v4533_v29 = vld [vmem:[#allocation2 + $0x2a8] ss:$16 sps:$4 sm:$0xff]  }
  0x6a   :  { %2451 = vmatprep.subr.bf16.mxu0 %v4452_v32  ;;  %2709 = vmatprep.subr.bf16.mxu1 %v4454_v33  ;;  %v4538_v30 = vld [vmem:[#allocation2 + $0x2c4] ss:$16 sps:$4 sm:$0xff]   ;;  %v4541_v31 = vld [vmem:[#allocation2 + $0x2cc] ss:$16 sps:$4 sm:$0xff]   ;;  %v4554_v47 = vld [vmem:[#allocation2 + $0x320] ss:$16 sps:$4 sm:$0xff]  }
  0x6b   :  { %v76_v32 = vld [vmem:[%s5428_s0 + $0x18] sm:$0xff]  ;;  %v4592_v5 = vld [vmem:[#allocation2 + $0x3e4] ss:$16 sps:$4 sm:$0xff]  }
  0x6c   :  { %v88_v33 = vld [vmem:[%s5428_s0 + $0x78] sm:$0xff] }
  0x6d   :  { %2452 = vmatpush1.bf16.msra.mxu0 %v4456_v34  ;;  %2710 = vmatpush1.bf16.msra.mxu1 %v4457_v35  ;;  %v4536_v34 = vld [vmem:[#allocation2 + $0x2c0] ss:$16 sps:$4 sm:$0xff]   ;;  %v4539_v35 = vld [vmem:[#allocation2 + $0x2c8] ss:$16 sps:$4 sm:$0xff]   ;;  %v4559_v46 = vld [vmem:[#allocation2 + $0x32c] ss:$16 sps:$4 sm:$0xff]  }
  0x6e   :  { %2453 = vmatprep.subr.bf16.mxu0 %v4458_v36  ;;  %2711 = vmatprep.subr.bf16.mxu1 %v4460_v37  ;;  %v100_v36 = vpack.c.bf16 %v88_v33, %v76_v32  ;;  %v4544_v37 = vld [vmem:[#allocation2 + $0x2e4] ss:$16 sps:$4 sm:$0xff]   ;;  %v4565_v50 = vld [vmem:[#allocation2 + $0x34c] ss:$16 sps:$4 sm:$0xff]   ;;  %v4587_v4 = vld [vmem:[#allocation2 + $0x3c8] ss:$16 sps:$4 sm:$0xff]  }
  0x6f   :  { %v4625_v32 = vld [vmem:[#allocation2 + $0x48c] ss:$16 sps:$4 sm:$0xff]   ;;  %v4620_v33 = vld [vmem:[#allocation2 + $0x480] ss:$16 sps:$4 sm:$0xff]  }
  0x71   :  { %2454 = vmatpush1.bf16.msra.mxu0 %v4462_v38  ;;  %2712 = vmatpush1.bf16.msra.mxu1 %v4463_v39  ;;  %v4547_v38 = vld [vmem:[#allocation2 + $0x2ec] ss:$16 sps:$4 sm:$0xff]   ;;  %v4542_v39 = vld [vmem:[#allocation2 + $0x2e0] ss:$16 sps:$4 sm:$0xff]  }
  0x72   :  { %2455 = vmatprep.subr.bf16.mxu0 %v4464_v40  ;;  %2713 = vmatprep.subr.bf16.mxu1 %v4466_v41  ;;  %v4545_v40 = vld [vmem:[#allocation2 + $0x2e8] ss:$16 sps:$4 sm:$0xff]   ;;  %v4550_v41 = vld [vmem:[#allocation2 + $0x304] ss:$16 sps:$4 sm:$0xff]  }
  0x75   :  { %2456 = vmatpush1.bf16.msra.mxu0 %v4468_v42  ;;  %2714 = vmatpush1.bf16.msra.mxu1 %v4469_v43  ;;  %v4553_v42 = vld [vmem:[#allocation2 + $0x30c] ss:$16 sps:$4 sm:$0xff]   ;;  %v4548_v43 = vld [vmem:[#allocation2 + $0x300] ss:$16 sps:$4 sm:$0xff]  }
  0x76   :  { %2457 = vmatprep.subr.bf16.mxu0 %v4470_v44  ;;  %2715 = vmatprep.subr.bf16.mxu1 %v4472_v45  ;;  %v4551_v44 = vld [vmem:[#allocation2 + $0x308] ss:$16 sps:$4 sm:$0xff]   ;;  %v4556_v45 = vld [vmem:[#allocation2 + $0x324] ss:$16 sps:$4 sm:$0xff]  }
  0x79   :  { %2458 = vmatpush1.bf16.msra.mxu0 %v4474_v48  ;;  %2716 = vmatpush1.bf16.msra.mxu1 %v4475_v49  ;;  %v4557_v48 = vld [vmem:[#allocation2 + $0x328] ss:$16 sps:$4 sm:$0xff]   ;;  %v4562_v49 = vld [vmem:[#allocation2 + $0x344] ss:$16 sps:$4 sm:$0xff]  }
  0x7a   :  { %2459 = vmatprep.subr.bf16.mxu0 %v4476_v51  ;;  %2717 = vmatprep.subr.bf16.mxu1 %v4478_v52  ;;  %v4560_v51 = vld [vmem:[#allocation2 + $0x340] ss:$16 sps:$4 sm:$0xff]   ;;  %v4563_v52 = vld [vmem:[#allocation2 + $0x348] ss:$16 sps:$4 sm:$0xff]  }
  0x7d   :  { %2460 = vmatpush1.bf16.msra.mxu0 %v4480_v53  ;;  %2718 = vmatpush1.bf16.msra.mxu1 %v4481_v54  ;;  %v4568_v53 = vld [vmem:[#allocation2 + $0x364] ss:$16 sps:$4 sm:$0xff]   ;;  %v4571_v54 = vld [vmem:[#allocation2 + $0x36c] ss:$16 sps:$4 sm:$0xff]  }
  0x7e   :  { %2461 = vmatprep.subr.bf16.mxu0 %v4482_v55  ;;  %2719 = vmatprep.subr.bf16.mxu1 %v4484_v56  ;;  %v4566_v55 = vld [vmem:[#allocation2 + $0x360] ss:$16 sps:$4 sm:$0xff]   ;;  %v4569_v56 = vld [vmem:[#allocation2 + $0x368] ss:$16 sps:$4 sm:$0xff]  }
  0x81   :  { %2462 = vmatpush1.bf16.msra.mxu0 %v4486_v57  ;;  %2720 = vmatpush1.bf16.msra.mxu1 %v4487_v58  ;;  %v4574_v57 = vld [vmem:[#allocation2 + $0x384] ss:$16 sps:$4 sm:$0xff]   ;;  %v4577_v58 = vld [vmem:[#allocation2 + $0x38c] ss:$16 sps:$4 sm:$0xff]  }
  0x82   :  { %2463 = vmatprep.subr.bf16.mxu0 %v4488_v59  ;;  %2721 = vmatprep.subr.bf16.mxu1 %v4490_v60  ;;  %v4572_v59 = vld [vmem:[#allocation2 + $0x380] ss:$16 sps:$4 sm:$0xff]   ;;  %v4575_v60 = vld [vmem:[#allocation2 + $0x388] ss:$16 sps:$4 sm:$0xff]  }
  0x85   :  { %2464 = vmatpush1.bf16.msra.mxu0 %v4492_v61  ;;  %2722 = vmatpush1.bf16.msra.mxu1 %v4493_v62  ;;  %v4580_v61 = vld [vmem:[#allocation2 + $0x3a4] ss:$16 sps:$4 sm:$0xff]   ;;  %v4583_v62 = vld [vmem:[#allocation2 + $0x3ac] ss:$16 sps:$4 sm:$0xff]  }
  0x86   :  { %2465 = vmatprep.subr.bf16.mxu0 %v4494_v63  ;;  %2723 = vmatprep.subr.bf16.mxu1 %v4496_v0  ;;  %v4578_v63 = vld [vmem:[#allocation2 + $0x3a0] ss:$16 sps:$4 sm:$0xff]   ;;  %v4581_v0 = vld [vmem:[#allocation2 + $0x3a8] ss:$16 sps:$4 sm:$0xff]  }
  0x89   :  { %2466 = vmatpush1.bf16.msra.mxu0 %v4498_v1  ;;  %2724 = vmatpush1.bf16.msra.mxu1 %v4499_v2  ;;  %v4586_v1 = vld [vmem:[#allocation2 + $0x3c4] ss:$16 sps:$4 sm:$0xff]   ;;  %v4589_v2 = vld [vmem:[#allocation2 + $0x3cc] ss:$16 sps:$4 sm:$0xff]  }
  0x8a   :  { %2478 = vmatprep.subr.bf16.mxu0 %v4502_v3  ;;  %2736 = vmatprep.subr.bf16.mxu1 %v4505_v6  ;;  %v4584_v3 = vld [vmem:[#allocation2 + $0x3c0] ss:$16 sps:$4 sm:$0xff]   ;;  %v4595_v6 = vld [vmem:[#allocation2 + $0x3ec] ss:$16 sps:$4 sm:$0xff]  }
  0x8c   :  { %2468 = vmatmul.mubr.bf16.vlgmr.msra.gmra.mrb[0].mxu0 %v97_v9  ;;  %2726 = vmatmul.mubr.bf16.vlgmr.msra.gmra.mrb[0].mxu1 %v97_v9  ;;  %v4598_v9 = vld [vmem:[#allocation2 + $0x404] ss:$16 sps:$4 sm:$0xff]  }
  0x8d   :  { %2479 = vmatpush1.bf16.msra.mxu0 %v4500_v7  ;;  %2737 = vmatpush1.bf16.msra.mxu1 %v4503_v8  ;;  %v4590_v7 = vld [vmem:[#allocation2 + $0x3e0] ss:$16 sps:$4 sm:$0xff]   ;;  %v4593_v8 = vld [vmem:[#allocation2 + $0x3e8] ss:$16 sps:$4 sm:$0xff]  }
  0x8e   :  { %2480 = vmatprep.subr.bf16.mxu0 %v4508_v10  ;;  %2738 = vmatprep.subr.bf16.mxu1 %v4511_v11  ;;  %v75_v10 = vld [vmem:[%s5428_s0 + $0x10] sm:$0xff] }
  0x8f   :  { %2510 = vmatprep.mubr.bf16.mxu0 %v100_v36  ;;  %2768 = vmatprep.mubr.bf16.mxu1 %v100_v36  ;;  %v87_v11 = vld [vmem:[%s5428_s0 + $0x70] sm:$0xff]  ;;  %v4631_v36 = vld [vmem:[#allocation2 + $0x4ac] ss:$16 sps:$4 sm:$0xff]  }
  0x91   :  { %2481 = vmatpush1.bf16.msra.mxu0 %v4506_v12  ;;  %2739 = vmatpush1.bf16.msra.mxu1 %v4509_v13  ;;  %v4601_v12 = vld [vmem:[#allocation2 + $0x40c] ss:$16 sps:$4 sm:$0xff]   ;;  %v4596_v13 = vld [vmem:[#allocation2 + $0x400] ss:$16 sps:$4 sm:$0xff]  }
  0x92   :  { %2482 = vmatprep.subr.bf16.mxu0 %v4514_v14  ;;  %2740 = vmatprep.subr.bf16.mxu1 %v4517_v15  ;;  %v4599_v14 = vld [vmem:[#allocation2 + $0x408] ss:$16 sps:$4 sm:$0xff]   ;;  %v99_v15 = vpack.c.bf16 %v87_v11, %v75_v10  ;;  %v4688_v11 = vld [vmem:[#allocation2 + $0x5e4] ss:$16 sps:$4 sm:$0xff]  }
  0x93   :  { %v4683_v10 = vld [vmem:[#allocation2 + $0x5c8] ss:$16 sps:$4 sm:$0xff]  }
  0x95   :  { %2483 = vmatpush1.bf16.msra.mxu0 %v4512_v16  ;;  %2741 = vmatpush1.bf16.msra.mxu1 %v4515_v17  ;;  %v4604_v16 = vld [vmem:[#allocation2 + $0x424] ss:$16 sps:$4 sm:$0xff]   ;;  %v4607_v17 = vld [vmem:[#allocation2 + $0x42c] ss:$16 sps:$4 sm:$0xff]  }
  0x96   :  { %2484 = vmatprep.subr.bf16.mxu0 %v4520_v18  ;;  %2742 = vmatprep.subr.bf16.mxu1 %v4523_v19  ;;  %v78_v18 = vld [vmem:[%s5428_s0 + $0x28] sm:$0xff] }
  0x97   :  { %v90_v19 = vld [vmem:[%s5428_s0 + $0x88] sm:$0xff] }
  0x99   :  { %2485 = vmatpush1.bf16.msra.mxu0 %v4518_v20  ;;  %2743 = vmatpush1.bf16.msra.mxu1 %v4521_v21  ;;  %v4602_v20 = vld [vmem:[#allocation2 + $0x420] ss:$16 sps:$4 sm:$0xff]   ;;  %v4605_v21 = vld [vmem:[#allocation2 + $0x428] ss:$16 sps:$4 sm:$0xff]  }
  0x9a   :  { %2486 = vmatprep.subr.bf16.mxu0 %v4526_v22  ;;  %2744 = vmatprep.subr.bf16.mxu1 %v4529_v23  ;;  %v102_v22 = vpack.c.bf16 %v90_v19, %v78_v18  ;;  %v4610_v23 = vld [vmem:[#allocation2 + $0x444] ss:$16 sps:$4 sm:$0xff]   ;;  %v4697_v18 = vld [vmem:[#allocation2 + $0x60c] ss:$16 sps:$4 sm:$0xff]   ;;  %v4692_v19 = vld [vmem:[#allocation2 + $0x600] ss:$16 sps:$4 sm:$0xff]  }
  0x9d   :  { %2487 = vmatpush1.bf16.msra.mxu0 %v4524_v24  ;;  %2745 = vmatpush1.bf16.msra.mxu1 %v4527_v25  ;;  %v4613_v24 = vld [vmem:[#allocation2 + $0x44c] ss:$16 sps:$4 sm:$0xff]   ;;  %v4608_v25 = vld [vmem:[#allocation2 + $0x440] ss:$16 sps:$4 sm:$0xff]  }
  0x9e   :  { %2488 = vmatprep.subr.bf16.mxu0 %v4532_v26  ;;  %2746 = vmatprep.subr.bf16.mxu1 %v4535_v27  ;;  %v4611_v26 = vld [vmem:[#allocation2 + $0x448] ss:$16 sps:$4 sm:$0xff]   ;;  %v4616_v27 = vld [vmem:[#allocation2 + $0x464] ss:$16 sps:$4 sm:$0xff]  }
  0xa1   :  { %2489 = vmatpush1.bf16.msra.mxu0 %v4530_v28  ;;  %2747 = vmatpush1.bf16.msra.mxu1 %v4533_v29  ;;  %v4619_v28 = vld [vmem:[#allocation2 + $0x46c] ss:$16 sps:$4 sm:$0xff]   ;;  %v4614_v29 = vld [vmem:[#allocation2 + $0x460] ss:$16 sps:$4 sm:$0xff]  }
  0xa2   :  { %2490 = vmatprep.subr.bf16.mxu0 %v4538_v30  ;;  %2748 = vmatprep.subr.bf16.mxu1 %v4541_v31  ;;  %v4617_v30 = vld [vmem:[#allocation2 + $0x468] ss:$16 sps:$4 sm:$0xff]   ;;  %v4622_v31 = vld [vmem:[#allocation2 + $0x484] ss:$16 sps:$4 sm:$0xff]  }
  0xa5   :  { %2491 = vmatpush1.bf16.msra.mxu0 %v4536_v34  ;;  %2749 = vmatpush1.bf16.msra.mxu1 %v4539_v35  ;;  %v4623_v34 = vld [vmem:[#allocation2 + $0x488] ss:$16 sps:$4 sm:$0xff]   ;;  %v4628_v35 = vld [vmem:[#allocation2 + $0x4a4] ss:$16 sps:$4 sm:$0xff]  }
  0xa6   :  { %2492 = vmatprep.subr.bf16.mxu0 %v4544_v37  ;;  %2750 = vmatprep.subr.bf16.mxu1 %v4547_v38  ;;  %v4626_v37 = vld [vmem:[#allocation2 + $0x4a0] ss:$16 sps:$4 sm:$0xff]   ;;  %v4629_v38 = vld [vmem:[#allocation2 + $0x4a8] ss:$16 sps:$4 sm:$0xff]  }
  0xa9   :  { %2493 = vmatpush1.bf16.msra.mxu0 %v4542_v39  ;;  %2751 = vmatpush1.bf16.msra.mxu1 %v4545_v40  ;;  %v4634_v39 = vld [vmem:[#allocation2 + $0x4c4] ss:$16 sps:$4 sm:$0xff]   ;;  %v4637_v40 = vld [vmem:[#allocation2 + $0x4cc] ss:$16 sps:$4 sm:$0xff]  }
  0xaa   :  { %2494 = vmatprep.subr.bf16.mxu0 %v4550_v41  ;;  %2752 = vmatprep.subr.bf16.mxu1 %v4553_v42  ;;  %v4632_v41 = vld [vmem:[#allocation2 + $0x4c0] ss:$16 sps:$4 sm:$0xff]   ;;  %v4635_v42 = vld [vmem:[#allocation2 + $0x4c8] ss:$16 sps:$4 sm:$0xff]  }
  0xad   :  { %2495 = vmatpush1.bf16.msra.mxu0 %v4548_v43  ;;  %2753 = vmatpush1.bf16.msra.mxu1 %v4551_v44  ;;  %v4640_v43 = vld [vmem:[#allocation2 + $0x4e4] ss:$16 sps:$4 sm:$0xff]   ;;  %v4643_v44 = vld [vmem:[#allocation2 + $0x4ec] ss:$16 sps:$4 sm:$0xff]  }
  0xae   :  { %2496 = vmatprep.subr.bf16.mxu0 %v4556_v45  ;;  %2754 = vmatprep.subr.bf16.mxu1 %v4559_v46  ;;  %v4638_v45 = vld [vmem:[#allocation2 + $0x4e0] ss:$16 sps:$4 sm:$0xff]   ;;  %v4641_v46 = vld [vmem:[#allocation2 + $0x4e8] ss:$16 sps:$4 sm:$0xff]  }
  0xb1   :  { %2497 = vmatpush1.bf16.msra.mxu0 %v4554_v47  ;;  %2755 = vmatpush1.bf16.msra.mxu1 %v4557_v48  ;;  %v4646_v47 = vld [vmem:[#allocation2 + $0x504] ss:$16 sps:$4 sm:$0xff]   ;;  %v4649_v48 = vld [vmem:[#allocation2 + $0x50c] ss:$16 sps:$4 sm:$0xff]  }
  0xb2   :  { %2498 = vmatprep.subr.bf16.mxu0 %v4562_v49  ;;  %2756 = vmatprep.subr.bf16.mxu1 %v4565_v50  ;;  %v4644_v49 = vld [vmem:[#allocation2 + $0x500] ss:$16 sps:$4 sm:$0xff]   ;;  %v4647_v50 = vld [vmem:[#allocation2 + $0x508] ss:$16 sps:$4 sm:$0xff]  }
  0xb5   :  { %2499 = vmatpush1.bf16.msra.mxu0 %v4560_v51  ;;  %2757 = vmatpush1.bf16.msra.mxu1 %v4563_v52  ;;  %v4652_v51 = vld [vmem:[#allocation2 + $0x524] ss:$16 sps:$4 sm:$0xff]   ;;  %v4655_v52 = vld [vmem:[#allocation2 + $0x52c] ss:$16 sps:$4 sm:$0xff]  }
  0xb6   :  { %2500 = vmatprep.subr.bf16.mxu0 %v4568_v53  ;;  %2758 = vmatprep.subr.bf16.mxu1 %v4571_v54  ;;  %v4650_v53 = vld [vmem:[#allocation2 + $0x520] ss:$16 sps:$4 sm:$0xff]   ;;  %v4653_v54 = vld [vmem:[#allocation2 + $0x528] ss:$16 sps:$4 sm:$0xff]  }
  0xb9   :  { %2501 = vmatpush1.bf16.msra.mxu0 %v4566_v55  ;;  %2759 = vmatpush1.bf16.msra.mxu1 %v4569_v56  ;;  %v4658_v55 = vld [vmem:[#allocation2 + $0x544] ss:$16 sps:$4 sm:$0xff]   ;;  %v4661_v56 = vld [vmem:[#allocation2 + $0x54c] ss:$16 sps:$4 sm:$0xff]  }
  0xba   :  { %2502 = vmatprep.subr.bf16.mxu0 %v4574_v57  ;;  %2760 = vmatprep.subr.bf16.mxu1 %v4577_v58  ;;  %v4656_v57 = vld [vmem:[#allocation2 + $0x540] ss:$16 sps:$4 sm:$0xff]   ;;  %v4659_v58 = vld [vmem:[#allocation2 + $0x548] ss:$16 sps:$4 sm:$0xff]  }
  0xbd   :  { %2503 = vmatpush1.bf16.msra.mxu0 %v4572_v59  ;;  %2761 = vmatpush1.bf16.msra.mxu1 %v4575_v60  ;;  %v4664_v59 = vld [vmem:[#allocation2 + $0x564] ss:$16 sps:$4 sm:$0xff]   ;;  %v4667_v60 = vld [vmem:[#allocation2 + $0x56c] ss:$16 sps:$4 sm:$0xff]  }
  0xbe   :  { %2504 = vmatprep.subr.bf16.mxu0 %v4580_v61  ;;  %2762 = vmatprep.subr.bf16.mxu1 %v4583_v62  ;;  %v4662_v61 = vld [vmem:[#allocation2 + $0x560] ss:$16 sps:$4 sm:$0xff]   ;;  %v4665_v62 = vld [vmem:[#allocation2 + $0x568] ss:$16 sps:$4 sm:$0xff]  }
  0xc1   :  { %2505 = vmatpush1.bf16.msra.mxu0 %v4578_v63  ;;  %2763 = vmatpush1.bf16.msra.mxu1 %v4581_v0  ;;  %v4670_v63 = vld [vmem:[#allocation2 + $0x584] ss:$16 sps:$4 sm:$0xff]   ;;  %v4673_v0 = vld [vmem:[#allocation2 + $0x58c] ss:$16 sps:$4 sm:$0xff]  }
  0xc2   :  { %2506 = vmatprep.subr.bf16.mxu0 %v4586_v1  ;;  %2764 = vmatprep.subr.bf16.mxu1 %v4589_v2  ;;  %v4668_v1 = vld [vmem:[#allocation2 + $0x580] ss:$16 sps:$4 sm:$0xff]   ;;  %v4671_v2 = vld [vmem:[#allocation2 + $0x588] ss:$16 sps:$4 sm:$0xff]  }
  0xc5   :  { %2507 = vmatpush1.bf16.msra.mxu0 %v4584_v3  ;;  %2765 = vmatpush1.bf16.msra.mxu1 %v4587_v4  ;;  %v4676_v3 = vld [vmem:[#allocation2 + $0x5a4] ss:$16 sps:$4 sm:$0xff]   ;;  %v4679_v4 = vld [vmem:[#allocation2 + $0x5ac] ss:$16 sps:$4 sm:$0xff]  }
  0xc6   :  { %2508 = vmatprep.subr.bf16.mxu0 %v4592_v5  ;;  %2766 = vmatprep.subr.bf16.mxu1 %v4595_v6  ;;  %v4674_v5 = vld [vmem:[#allocation2 + $0x5a0] ss:$16 sps:$4 sm:$0xff]   ;;  %v4677_v6 = vld [vmem:[#allocation2 + $0x5a8] ss:$16 sps:$4 sm:$0xff]  }
  0xc9   :  { %2509 = vmatpush1.bf16.msra.mxu0 %v4590_v7  ;;  %2767 = vmatpush1.bf16.msra.mxu1 %v4593_v8  ;;  %v4682_v7 = vld [vmem:[#allocation2 + $0x5c4] ss:$16 sps:$4 sm:$0xff]   ;;  %v4685_v8 = vld [vmem:[#allocation2 + $0x5cc] ss:$16 sps:$4 sm:$0xff]  }
  0xca   :  { %2521 = vmatprep.subr.bf16.mxu0 %v4598_v9  ;;  %2779 = vmatprep.subr.bf16.mxu1 %v4601_v12  ;;  %v4680_v9 = vld [vmem:[#allocation2 + $0x5c0] ss:$16 sps:$4 sm:$0xff]   ;;  %v4691_v12 = vld [vmem:[#allocation2 + $0x5ec] ss:$16 sps:$4 sm:$0xff]  }
  0xcc   :  { %2511 = vmatmul.mubr.bf16.vlgmr.msra.gmra.mrb[0].mxu0 %v99_v15  ;;  %2769 = vmatmul.mubr.bf16.vlgmr.msra.gmra.mrb[0].mxu1 %v99_v15  ;;  %v4694_v15 = vld [vmem:[#allocation2 + $0x604] ss:$16 sps:$4 sm:$0xff]  }
  0xcd   :  { %2522 = vmatpush1.bf16.msra.mxu0 %v4596_v13  ;;  %2780 = vmatpush1.bf16.msra.mxu1 %v4599_v14  ;;  %v4686_v13 = vld [vmem:[#allocation2 + $0x5e0] ss:$16 sps:$4 sm:$0xff]   ;;  %v4689_v14 = vld [vmem:[#allocation2 + $0x5e8] ss:$16 sps:$4 sm:$0xff]  }
  0xce   :  { %2523 = vmatprep.subr.bf16.mxu0 %v4604_v16  ;;  %2781 = vmatprep.subr.bf16.mxu1 %v4607_v17  ;;  %v77_v16 = vld [vmem:[%s5428_s0 + $0x20] sm:$0xff] }
  0xcf   :  { %2553 = vmatprep.mubr.bf16.mxu0 %v102_v22  ;;  %2811 = vmatprep.mubr.bf16.mxu1 %v102_v22  ;;  %v89_v17 = vld [vmem:[%s5428_s0 + $0x80] sm:$0xff]  ;;  %v80_v22 = vld [vmem:[%s5428_s0 + $0x38] sm:$0xff] }
  0xd1   :  { %2524 = vmatpush1.bf16.msra.mxu0 %v4602_v20  ;;  %2782 = vmatpush1.bf16.msra.mxu1 %v4605_v21  ;;  %v4695_v20 = vld [vmem:[#allocation2 + $0x608] ss:$16 sps:$4 sm:$0xff]   ;;  %v101_v21 = vpack.c.bf16 %v89_v17, %v77_v16  ;;  %v4784_v17 = vld [vmem:[#allocation2 + $0x7e4] ss:$16 sps:$4 sm:$0xff]  }
  0xd2   :  { %2525 = vmatprep.subr.bf16.mxu0 %v4610_v23  ;;  %2783 = vmatprep.subr.bf16.mxu1 %v4613_v24  ;;  %v92_v23 = vld [vmem:[%s5428_s0 + $0x98] sm:$0xff]  ;;  %v4700_v24 = vld [vmem:[#allocation2 + $0x624] ss:$16 sps:$4 sm:$0xff]  }
  0xd3   :  { %v4779_v16 = vld [vmem:[#allocation2 + $0x7c8] ss:$16 sps:$4 sm:$0xff]  }
  0xd5   :  { %2526 = vmatpush1.bf16.msra.mxu0 %v4608_v25  ;;  %2784 = vmatpush1.bf16.msra.mxu1 %v4611_v26  ;;  %v4703_v25 = vld [vmem:[#allocation2 + $0x62c] ss:$16 sps:$4 sm:$0xff]   ;;  %v104_v26 = vpack.c.bf16 %v92_v23, %v80_v22  ;;  %v79_v22 = vld [vmem:[%s5428_s0 + $0x30] sm:$0xff] }
  0xd6   :  { %2527 = vmatprep.subr.bf16.mxu0 %v4616_v27  ;;  %2785 = vmatprep.subr.bf16.mxu1 %v4619_v28  ;;  %v4698_v27 = vld [vmem:[#allocation2 + $0x620] ss:$16 sps:$4 sm:$0xff]   ;;  %v4701_v28 = vld [vmem:[#allocation2 + $0x628] ss:$16 sps:$4 sm:$0xff]  }
  0xd7   :  { %v91_v23 = vld [vmem:[%s5428_s0 + $0x90] sm:$0xff] }
  0xd9   :  { %2528 = vmatpush1.bf16.msra.mxu0 %v4614_v29  ;;  %2786 = vmatpush1.bf16.msra.mxu1 %v4617_v30  ;;  %v4706_v29 = vld [vmem:[#allocation2 + $0x644] ss:$16 sps:$4 sm:$0xff]   ;;  %v4709_v30 = vld [vmem:[#allocation2 + $0x64c] ss:$16 sps:$4 sm:$0xff]  }
  0xda   :  { %2529 = vmatprep.subr.bf16.mxu0 %v4622_v31  ;;  %2787 = vmatprep.subr.bf16.mxu1 %v4625_v32  ;;  %v4704_v31 = vld [vmem:[#allocation2 + $0x640] ss:$16 sps:$4 sm:$0xff]   ;;  %v4707_v32 = vld [vmem:[#allocation2 + $0x648] ss:$16 sps:$4 sm:$0xff]  }
  0xdd   :  { %2530 = vmatpush1.bf16.msra.mxu0 %v4620_v33  ;;  %2788 = vmatpush1.bf16.msra.mxu1 %v4623_v34  ;;  %v4712_v33 = vld [vmem:[#allocation2 + $0x664] ss:$16 sps:$4 sm:$0xff]   ;;  %v4715_v34 = vld [vmem:[#allocation2 + $0x66c] ss:$16 sps:$4 sm:$0xff]  }
  0xde   :  { %2531 = vmatprep.subr.bf16.mxu0 %v4628_v35  ;;  %2789 = vmatprep.subr.bf16.mxu1 %v4631_v36  ;;  %v4710_v35 = vld [vmem:[#allocation2 + $0x660] ss:$16 sps:$4 sm:$0xff]   ;;  %v4713_v36 = vld [vmem:[#allocation2 + $0x668] ss:$16 sps:$4 sm:$0xff]  }
  0xe1   :  { %2532 = vmatpush1.bf16.msra.mxu0 %v4626_v37  ;;  %2790 = vmatpush1.bf16.msra.mxu1 %v4629_v38  ;;  %v4718_v37 = vld [vmem:[#allocation2 + $0x684] ss:$16 sps:$4 sm:$0xff]   ;;  %v4721_v38 = vld [vmem:[#allocation2 + $0x68c] ss:$16 sps:$4 sm:$0xff]  }
  0xe2   :  { %2533 = vmatprep.subr.bf16.mxu0 %v4634_v39  ;;  %2791 = vmatprep.subr.bf16.mxu1 %v4637_v40  ;;  %v4716_v39 = vld [vmem:[#allocation2 + $0x680] ss:$16 sps:$4 sm:$0xff]   ;;  %v4719_v40 = vld [vmem:[#allocation2 + $0x688] ss:$16 sps:$4 sm:$0xff]  }
  0xe5   :  { %2534 = vmatpush1.bf16.msra.mxu0 %v4632_v41  ;;  %2792 = vmatpush1.bf16.msra.mxu1 %v4635_v42  ;;  %v4724_v41 = vld [vmem:[#allocation2 + $0x6a4] ss:$16 sps:$4 sm:$0xff]   ;;  %v4727_v42 = vld [vmem:[#allocation2 + $0x6ac] ss:$16 sps:$4 sm:$0xff]  }
  0xe6   :  { %2535 = vmatprep.subr.bf16.mxu0 %v4640_v43  ;;  %2793 = vmatprep.subr.bf16.mxu1 %v4643_v44  ;;  %v4722_v43 = vld [vmem:[#allocation2 + $0x6a0] ss:$16 sps:$4 sm:$0xff]   ;;  %v4725_v44 = vld [vmem:[#allocation2 + $0x6a8] ss:$16 sps:$4 sm:$0xff]  }
  0xe9   :  { %2536 = vmatpush1.bf16.msra.mxu0 %v4638_v45  ;;  %2794 = vmatpush1.bf16.msra.mxu1 %v4641_v46  ;;  %v4730_v45 = vld [vmem:[#allocation2 + $0x6c4] ss:$16 sps:$4 sm:$0xff]   ;;  %v4733_v46 = vld [vmem:[#allocation2 + $0x6cc] ss:$16 sps:$4 sm:$0xff]  }
  0xea   :  { %2537 = vmatprep.subr.bf16.mxu0 %v4646_v47  ;;  %2795 = vmatprep.subr.bf16.mxu1 %v4649_v48  ;;  %v4728_v47 = vld [vmem:[#allocation2 + $0x6c0] ss:$16 sps:$4 sm:$0xff]   ;;  %v4731_v48 = vld [vmem:[#allocation2 + $0x6c8] ss:$16 sps:$4 sm:$0xff]  }
  0xed   :  { %2538 = vmatpush1.bf16.msra.mxu0 %v4644_v49  ;;  %2796 = vmatpush1.bf16.msra.mxu1 %v4647_v50  ;;  %v4736_v49 = vld [vmem:[#allocation2 + $0x6e4] ss:$16 sps:$4 sm:$0xff]   ;;  %v4739_v50 = vld [vmem:[#allocation2 + $0x6ec] ss:$16 sps:$4 sm:$0xff]  }
  0xee   :  { %2539 = vmatprep.subr.bf16.mxu0 %v4652_v51  ;;  %2797 = vmatprep.subr.bf16.mxu1 %v4655_v52  ;;  %v4734_v51 = vld [vmem:[#allocation2 + $0x6e0] ss:$16 sps:$4 sm:$0xff]   ;;  %v4737_v52 = vld [vmem:[#allocation2 + $0x6e8] ss:$16 sps:$4 sm:$0xff]  }
  0xf1   :  { %2540 = vmatpush1.bf16.msra.mxu0 %v4650_v53  ;;  %2798 = vmatpush1.bf16.msra.mxu1 %v4653_v54  ;;  %v4742_v53 = vld [vmem:[#allocation2 + $0x704] ss:$16 sps:$4 sm:$0xff]   ;;  %v4745_v54 = vld [vmem:[#allocation2 + $0x70c] ss:$16 sps:$4 sm:$0xff]  }
  0xf2   :  { %2541 = vmatprep.subr.bf16.mxu0 %v4658_v55  ;;  %2799 = vmatprep.subr.bf16.mxu1 %v4661_v56  ;;  %v4740_v55 = vld [vmem:[#allocation2 + $0x700] ss:$16 sps:$4 sm:$0xff]   ;;  %v4743_v56 = vld [vmem:[#allocation2 + $0x708] ss:$16 sps:$4 sm:$0xff]  }
  0xf5   :  { %2542 = vmatpush1.bf16.msra.mxu0 %v4656_v57  ;;  %2800 = vmatpush1.bf16.msra.mxu1 %v4659_v58  ;;  %v4748_v57 = vld [vmem:[#allocation2 + $0x724] ss:$16 sps:$4 sm:$0xff]   ;;  %v4751_v58 = vld [vmem:[#allocation2 + $0x72c] ss:$16 sps:$4 sm:$0xff]  }
  0xf6   :  { %2543 = vmatprep.subr.bf16.mxu0 %v4664_v59  ;;  %2801 = vmatprep.subr.bf16.mxu1 %v4667_v60  ;;  %v4746_v59 = vld [vmem:[#allocation2 + $0x720] ss:$16 sps:$4 sm:$0xff]   ;;  %v4749_v60 = vld [vmem:[#allocation2 + $0x728] ss:$16 sps:$4 sm:$0xff]  }
  0xf9   :  { %2544 = vmatpush1.bf16.msra.mxu0 %v4662_v61  ;;  %2802 = vmatpush1.bf16.msra.mxu1 %v4665_v62  ;;  %v4754_v61 = vld [vmem:[#allocation2 + $0x744] ss:$16 sps:$4 sm:$0xff]   ;;  %v4757_v62 = vld [vmem:[#allocation2 + $0x74c] ss:$16 sps:$4 sm:$0xff]  }
  0xfa   :  { %2545 = vmatprep.subr.bf16.mxu0 %v4670_v63  ;;  %2803 = vmatprep.subr.bf16.mxu1 %v4673_v0  ;;  %v4752_v63 = vld [vmem:[#allocation2 + $0x740] ss:$16 sps:$4 sm:$0xff]   ;;  %v4755_v0 = vld [vmem:[#allocation2 + $0x748] ss:$16 sps:$4 sm:$0xff]  }
  0xfd   :  { %2546 = vmatpush1.bf16.msra.mxu0 %v4668_v1  ;;  %2804 = vmatpush1.bf16.msra.mxu1 %v4671_v2  ;;  %v4760_v1 = vld [vmem:[#allocation2 + $0x764] ss:$16 sps:$4 sm:$0xff]   ;;  %v4763_v2 = vld [vmem:[#allocation2 + $0x76c] ss:$16 sps:$4 sm:$0xff]  }
  0xfe   :  { %2547 = vmatprep.subr.bf16.mxu0 %v4676_v3  ;;  %2805 = vmatprep.subr.bf16.mxu1 %v4679_v4  ;;  %v4758_v3 = vld [vmem:[#allocation2 + $0x760] ss:$16 sps:$4 sm:$0xff]   ;;  %v4761_v4 = vld [vmem:[#allocation2 + $0x768] ss:$16 sps:$4 sm:$0xff]  }
 0x101   :  { %2548 = vmatpush1.bf16.msra.mxu0 %v4674_v5  ;;  %2806 = vmatpush1.bf16.msra.mxu1 %v4677_v6  ;;  %v4766_v5 = vld [vmem:[#allocation2 + $0x784] ss:$16 sps:$4 sm:$0xff]   ;;  %v4769_v6 = vld [vmem:[#allocation2 + $0x78c] ss:$16 sps:$4 sm:$0xff]  }
 0x102   :  { %2549 = vmatprep.subr.bf16.mxu0 %v4682_v7  ;;  %2807 = vmatprep.subr.bf16.mxu1 %v4685_v8  ;;  %v4764_v7 = vld [vmem:[#allocation2 + $0x780] ss:$16 sps:$4 sm:$0xff]   ;;  %v4767_v8 = vld [vmem:[#allocation2 + $0x788] ss:$16 sps:$4 sm:$0xff]  }
 0x105   :  { %2550 = vmatpush1.bf16.msra.mxu0 %v4680_v9  ;;  %2808 = vmatpush1.bf16.msra.mxu1 %v4683_v10  ;;  %v4772_v9 = vld [vmem:[#allocation2 + $0x7a4] ss:$16 sps:$4 sm:$0xff]   ;;  %v4775_v10 = vld [vmem:[#allocation2 + $0x7ac] ss:$16 sps:$4 sm:$0xff]  }
 0x106   :  { %2551 = vmatprep.subr.bf16.mxu0 %v4688_v11  ;;  %2809 = vmatprep.subr.bf16.mxu1 %v4691_v12  ;;  %v4770_v11 = vld [vmem:[#allocation2 + $0x7a0] ss:$16 sps:$4 sm:$0xff]   ;;  %v4773_v12 = vld [vmem:[#allocation2 + $0x7a8] ss:$16 sps:$4 sm:$0xff]  }
 0x109   :  { %2552 = vmatpush1.bf16.msra.mxu0 %v4686_v13  ;;  %2810 = vmatpush1.bf16.msra.mxu1 %v4689_v14  ;;  %v4778_v13 = vld [vmem:[#allocation2 + $0x7c4] ss:$16 sps:$4 sm:$0xff]   ;;  %v4781_v14 = vld [vmem:[#allocation2 + $0x7cc] ss:$16 sps:$4 sm:$0xff]  }
 0x10a   :  { %2564 = vmatprep.subr.bf16.mxu0 %v4694_v15  ;;  %2822 = vmatprep.subr.bf16.mxu1 %v4697_v18  ;;  %v4776_v15 = vld [vmem:[#allocation2 + $0x7c0] ss:$16 sps:$4 sm:$0xff]   ;;  %v4787_v18 = vld [vmem:[#allocation2 + $0x7ec] ss:$16 sps:$4 sm:$0xff]  }
 0x10c   :  { %2554 = vmatmul.mubr.bf16.vlgmr.msra.gmra.mrb[0].mxu0 %v101_v21  ;;  %2812 = vmatmul.mubr.bf16.vlgmr.msra.gmra.mrb[0].mxu1 %v101_v21  ;;  %v4790_v21 = vld [vmem:[#allocation2 + $0x804] ss:$16 sps:$4 sm:$0xff]  }
 0x10d   :  { %2565 = vmatpush1.bf16.msra.mxu0 %v4692_v19  ;;  %2823 = vmatpush1.bf16.msra.mxu1 %v4695_v20  ;;  %v4782_v19 = vld [vmem:[#allocation2 + $0x7e0] ss:$16 sps:$4 sm:$0xff]   ;;  %v4785_v20 = vld [vmem:[#allocation2 + $0x7e8] ss:$16 sps:$4 sm:$0xff]  }
 0x10e   :  { %2566 = vmatprep.subr.bf16.mxu0 %v4700_v24  ;;  %2824 = vmatprep.subr.bf16.mxu1 %v4703_v25  ;;  %v4793_v24 = vld [vmem:[#allocation2 + $0x80c] ss:$16 sps:$4 sm:$0xff]   ;;  %v4788_v25 = vld [vmem:[#allocation2 + $0x800] ss:$16 sps:$4 sm:$0xff]  }
 0x10f   :  { %2596 = vmatprep.mubr.bf16.mxu0 %v104_v26  ;;  %2854 = vmatprep.mubr.bf16.mxu1 %v104_v26  ;;  %v4791_v26 = vld [vmem:[#allocation2 + $0x808] ss:$16 sps:$4 sm:$0xff]  }
 0x111   :  { %2567 = vmatpush1.bf16.msra.mxu0 %v4698_v27  ;;  %2825 = vmatpush1.bf16.msra.mxu1 %v4701_v28  ;;  %v103_v27 = vpack.c.bf16 %v91_v23, %v79_v22  ;;  %v82_v28 = vld [vmem:[%s5428_s0 + $0x48] sm:$0xff]  ;;  %v4880_v23 = vld [vmem:[#allocation2 + $0x9e4] ss:$16 sps:$4 sm:$0xff]  }
 0x112   :  { %2568 = vmatprep.subr.bf16.mxu0 %v4706_v29  ;;  %2826 = vmatprep.subr.bf16.mxu1 %v4709_v30  ;;  %v94_v29 = vld [vmem:[%s5428_s0 + $0xa8] sm:$0xff]  ;;  %v4796_v30 = vld [vmem:[#allocation2 + $0x824] ss:$16 sps:$4 sm:$0xff]  }
 0x113   :  { %v4875_v22 = vld [vmem:[#allocation2 + $0x9c8] ss:$16 sps:$4 sm:$0xff]  }
 0x115   :  { %2569 = vmatpush1.bf16.msra.mxu0 %v4704_v31  ;;  %2827 = vmatpush1.bf16.msra.mxu1 %v4707_v32  ;;  %v4799_v31 = vld [vmem:[#allocation2 + $0x82c] ss:$16 sps:$4 sm:$0xff]   ;;  %v106_v32 = vpack.c.bf16 %v94_v29, %v82_v28  ;;  %v93_v28 = vld [vmem:[%s5428_s0 + $0xa0] sm:$0xff] }
 0x116   :  { %2570 = vmatprep.subr.bf16.mxu0 %v4712_v33  ;;  %2828 = vmatprep.subr.bf16.mxu1 %v4715_v34  ;;  %v4794_v33 = vld [vmem:[#allocation2 + $0x820] ss:$16 sps:$4 sm:$0xff]   ;;  %v4797_v34 = vld [vmem:[#allocation2 + $0x828] ss:$16 sps:$4 sm:$0xff]   ;;  %v4886_v29 = vld [vmem:[#allocation2 + $0xa04] ss:$16 sps:$4 sm:$0xff]  }
 0x119   :  { %2571 = vmatpush1.bf16.msra.mxu0 %v4710_v35  ;;  %2829 = vmatpush1.bf16.msra.mxu1 %v4713_v36  ;;  %v4802_v35 = vld [vmem:[#allocation2 + $0x844] ss:$16 sps:$4 sm:$0xff]   ;;  %v4805_v36 = vld [vmem:[#allocation2 + $0x84c] ss:$16 sps:$4 sm:$0xff]  }
 0x11a   :  { %2572 = vmatprep.subr.bf16.mxu0 %v4718_v37  ;;  %2830 = vmatprep.subr.bf16.mxu1 %v4721_v38  ;;  %v4800_v37 = vld [vmem:[#allocation2 + $0x840] ss:$16 sps:$4 sm:$0xff]   ;;  %v4803_v38 = vld [vmem:[#allocation2 + $0x848] ss:$16 sps:$4 sm:$0xff]  }
 0x11d   :  { %2573 = vmatpush1.bf16.msra.mxu0 %v4716_v39  ;;  %2831 = vmatpush1.bf16.msra.mxu1 %v4719_v40  ;;  %v4808_v39 = vld [vmem:[#allocation2 + $0x864] ss:$16 sps:$4 sm:$0xff]   ;;  %v4811_v40 = vld [vmem:[#allocation2 + $0x86c] ss:$16 sps:$4 sm:$0xff]  }
 0x11e   :  { %2574 = vmatprep.subr.bf16.mxu0 %v4724_v41  ;;  %2832 = vmatprep.subr.bf16.mxu1 %v4727_v42  ;;  %v4806_v41 = vld [vmem:[#allocation2 + $0x860] ss:$16 sps:$4 sm:$0xff]   ;;  %v4809_v42 = vld [vmem:[#allocation2 + $0x868] ss:$16 sps:$4 sm:$0xff]  }
 0x121   :  { %2575 = vmatpush1.bf16.msra.mxu0 %v4722_v43  ;;  %2833 = vmatpush1.bf16.msra.mxu1 %v4725_v44  ;;  %v4814_v43 = vld [vmem:[#allocation2 + $0x884] ss:$16 sps:$4 sm:$0xff]   ;;  %v4817_v44 = vld [vmem:[#allocation2 + $0x88c] ss:$16 sps:$4 sm:$0xff]  }
 0x122   :  { %2576 = vmatprep.subr.bf16.mxu0 %v4730_v45  ;;  %2834 = vmatprep.subr.bf16.mxu1 %v4733_v46  ;;  %v4812_v45 = vld [vmem:[#allocation2 + $0x880] ss:$16 sps:$4 sm:$0xff]   ;;  %v4815_v46 = vld [vmem:[#allocation2 + $0x888] ss:$16 sps:$4 sm:$0xff]  }
 0x125   :  { %2577 = vmatpush1.bf16.msra.mxu0 %v4728_v47  ;;  %2835 = vmatpush1.bf16.msra.mxu1 %v4731_v48  ;;  %v4820_v47 = vld [vmem:[#allocation2 + $0x8a4] ss:$16 sps:$4 sm:$0xff]   ;;  %v4823_v48 = vld [vmem:[#allocation2 + $0x8ac] ss:$16 sps:$4 sm:$0xff]  }
 0x126   :  { %2578 = vmatprep.subr.bf16.mxu0 %v4736_v49  ;;  %2836 = vmatprep.subr.bf16.mxu1 %v4739_v50  ;;  %v4818_v49 = vld [vmem:[#allocation2 + $0x8a0] ss:$16 sps:$4 sm:$0xff]   ;;  %v4821_v50 = vld [vmem:[#allocation2 + $0x8a8] ss:$16 sps:$4 sm:$0xff]  }
 0x129   :  { %2579 = vmatpush1.bf16.msra.mxu0 %v4734_v51  ;;  %2837 = vmatpush1.bf16.msra.mxu1 %v4737_v52  ;;  %v4826_v51 = vld [vmem:[#allocation2 + $0x8c4] ss:$16 sps:$4 sm:$0xff]   ;;  %v4829_v52 = vld [vmem:[#allocation2 + $0x8cc] ss:$16 sps:$4 sm:$0xff]  }
 0x12a   :  { %2580 = vmatprep.subr.bf16.mxu0 %v4742_v53  ;;  %2838 = vmatprep.subr.bf16.mxu1 %v4745_v54  ;;  %v4824_v53 = vld [vmem:[#allocation2 + $0x8c0] ss:$16 sps:$4 sm:$0xff]   ;;  %v4827_v54 = vld [vmem:[#allocation2 + $0x8c8] ss:$16 sps:$4 sm:$0xff]  }
 0x12d   :  { %2581 = vmatpush1.bf16.msra.mxu0 %v4740_v55  ;;  %2839 = vmatpush1.bf16.msra.mxu1 %v4743_v56  ;;  %v4832_v55 = vld [vmem:[#allocation2 + $0x8e4] ss:$16 sps:$4 sm:$0xff]   ;;  %v4835_v56 = vld [vmem:[#allocation2 + $0x8ec] ss:$16 sps:$4 sm:$0xff]  }
 0x12e   :  { %2582 = vmatprep.subr.bf16.mxu0 %v4748_v57  ;;  %2840 = vmatprep.subr.bf16.mxu1 %v4751_v58  ;;  %v4830_v57 = vld [vmem:[#allocation2 + $0x8e0] ss:$16 sps:$4 sm:$0xff]   ;;  %v4833_v58 = vld [vmem:[#allocation2 + $0x8e8] ss:$16 sps:$4 sm:$0xff]  }
 0x131   :  { %2583 = vmatpush1.bf16.msra.mxu0 %v4746_v59  ;;  %2841 = vmatpush1.bf16.msra.mxu1 %v4749_v60  ;;  %v4838_v59 = vld [vmem:[#allocation2 + $0x904] ss:$16 sps:$4 sm:$0xff]   ;;  %v4841_v60 = vld [vmem:[#allocation2 + $0x90c] ss:$16 sps:$4 sm:$0xff]  }
 0x132   :  { %2584 = vmatprep.subr.bf16.mxu0 %v4754_v61  ;;  %2842 = vmatprep.subr.bf16.mxu1 %v4757_v62  ;;  %v4836_v61 = vld [vmem:[#allocation2 + $0x900] ss:$16 sps:$4 sm:$0xff]   ;;  %v4839_v62 = vld [vmem:[#allocation2 + $0x908] ss:$16 sps:$4 sm:$0xff]  }
 0x135   :  { %2585 = vmatpush1.bf16.msra.mxu0 %v4752_v63  ;;  %2843 = vmatpush1.bf16.msra.mxu1 %v4755_v0  ;;  %v4844_v63 = vld [vmem:[#allocation2 + $0x924] ss:$16 sps:$4 sm:$0xff]   ;;  %v4847_v0 = vld [vmem:[#allocation2 + $0x92c] ss:$16 sps:$4 sm:$0xff]  }
 0x136   :  { %2586 = vmatprep.subr.bf16.mxu0 %v4760_v1  ;;  %2844 = vmatprep.subr.bf16.mxu1 %v4763_v2  ;;  %v4842_v1 = vld [vmem:[#allocation2 + $0x920] ss:$16 sps:$4 sm:$0xff]   ;;  %v4845_v2 = vld [vmem:[#allocation2 + $0x928] ss:$16 sps:$4 sm:$0xff]  }
 0x139   :  { %2587 = vmatpush1.bf16.msra.mxu0 %v4758_v3  ;;  %2845 = vmatpush1.bf16.msra.mxu1 %v4761_v4  ;;  %v4850_v3 = vld [vmem:[#allocation2 + $0x944] ss:$16 sps:$4 sm:$0xff]   ;;  %v4853_v4 = vld [vmem:[#allocation2 + $0x94c] ss:$16 sps:$4 sm:$0xff]  }
 0x13a   :  { %2588 = vmatprep.subr.bf16.mxu0 %v4766_v5  ;;  %2846 = vmatprep.subr.bf16.mxu1 %v4769_v6  ;;  %v4848_v5 = vld [vmem:[#allocation2 + $0x940] ss:$16 sps:$4 sm:$0xff]   ;;  %v4851_v6 = vld [vmem:[#allocation2 + $0x948] ss:$16 sps:$4 sm:$0xff]  }
 0x13d   :  { %2589 = vmatpush1.bf16.msra.mxu0 %v4764_v7  ;;  %2847 = vmatpush1.bf16.msra.mxu1 %v4767_v8  ;;  %v4856_v7 = vld [vmem:[#allocation2 + $0x964] ss:$16 sps:$4 sm:$0xff]   ;;  %v4859_v8 = vld [vmem:[#allocation2 + $0x96c] ss:$16 sps:$4 sm:$0xff]  }
 0x13e   :  { %2590 = vmatprep.subr.bf16.mxu0 %v4772_v9  ;;  %2848 = vmatprep.subr.bf16.mxu1 %v4775_v10  ;;  %v4854_v9 = vld [vmem:[#allocation2 + $0x960] ss:$16 sps:$4 sm:$0xff]   ;;  %v4857_v10 = vld [vmem:[#allocation2 + $0x968] ss:$16 sps:$4 sm:$0xff]  }
 0x141   :  { %2591 = vmatpush1.bf16.msra.mxu0 %v4770_v11  ;;  %2849 = vmatpush1.bf16.msra.mxu1 %v4773_v12  ;;  %v4862_v11 = vld [vmem:[#allocation2 + $0x984] ss:$16 sps:$4 sm:$0xff]   ;;  %v4865_v12 = vld [vmem:[#allocation2 + $0x98c] ss:$16 sps:$4 sm:$0xff]  }
 0x142   :  { %2592 = vmatprep.subr.bf16.mxu0 %v4778_v13  ;;  %2850 = vmatprep.subr.bf16.mxu1 %v4781_v14  ;;  %v4860_v13 = vld [vmem:[#allocation2 + $0x980] ss:$16 sps:$4 sm:$0xff]   ;;  %v4863_v14 = vld [vmem:[#allocation2 + $0x988] ss:$16 sps:$4 sm:$0xff]  }
 0x145   :  { %2593 = vmatpush1.bf16.msra.mxu0 %v4776_v15  ;;  %2851 = vmatpush1.bf16.msra.mxu1 %v4779_v16  ;;  %v4868_v15 = vld [vmem:[#allocation2 + $0x9a4] ss:$16 sps:$4 sm:$0xff]   ;;  %v4871_v16 = vld [vmem:[#allocation2 + $0x9ac] ss:$16 sps:$4 sm:$0xff]  }
 0x146   :  { %2594 = vmatprep.subr.bf16.mxu0 %v4784_v17  ;;  %2852 = vmatprep.subr.bf16.mxu1 %v4787_v18  ;;  %v4866_v17 = vld [vmem:[#allocation2 + $0x9a0] ss:$16 sps:$4 sm:$0xff]   ;;  %v4869_v18 = vld [vmem:[#allocation2 + $0x9a8] ss:$16 sps:$4 sm:$0xff]  }
 0x149   :  { %2595 = vmatpush1.bf16.msra.mxu0 %v4782_v19  ;;  %2853 = vmatpush1.bf16.msra.mxu1 %v4785_v20  ;;  %v4874_v19 = vld [vmem:[#allocation2 + $0x9c4] ss:$16 sps:$4 sm:$0xff]   ;;  %v4877_v20 = vld [vmem:[#allocation2 + $0x9cc] ss:$16 sps:$4 sm:$0xff]  }
 0x14a   :  { %2607 = vmatprep.subr.bf16.mxu0 %v4790_v21  ;;  %2865 = vmatprep.subr.bf16.mxu1 %v4793_v24  ;;  %v4872_v21 = vld [vmem:[#allocation2 + $0x9c0] ss:$16 sps:$4 sm:$0xff]   ;;  %v4883_v24 = vld [vmem:[#allocation2 + $0x9ec] ss:$16 sps:$4 sm:$0xff]  }
 0x14c   :  { %2597 = vmatmul.mubr.bf16.vlgmr.msra.gmra.mrb[0].mxu0 %v103_v27  ;;  %2855 = vmatmul.mubr.bf16.vlgmr.msra.gmra.mrb[0].mxu1 %v103_v27  ;;  %v81_v27 = vld [vmem:[%s5428_s0 + $0x40] sm:$0xff] }
 0x14d   :  { %2608 = vmatpush1.bf16.msra.mxu0 %v4788_v25  ;;  %2866 = vmatpush1.bf16.msra.mxu1 %v4791_v26  ;;  %v4878_v25 = vld [vmem:[#allocation2 + $0x9e0] ss:$16 sps:$4 sm:$0xff]   ;;  %v4881_v26 = vld [vmem:[#allocation2 + $0x9e8] ss:$16 sps:$4 sm:$0xff]  }
 0x14e   :  { %2609 = vmatprep.subr.bf16.mxu0 %v4796_v30  ;;  %2867 = vmatprep.subr.bf16.mxu1 %v4799_v31  ;;  %v4889_v30 = vld [vmem:[#allocation2 + $0xa0c] ss:$16 sps:$4 sm:$0xff]  }
 0x14f   :  { %2639 = vmatprep.mubr.bf16.mxu0 %v106_v32  ;;  %2897 = vmatprep.mubr.bf16.mxu1 %v106_v32  ;;  %v84_v31 = vld [vmem:[%s5428_s0 + $0x58] sm:$0xff] }
 0x150   :  { %v96_v32 = vld [vmem:[%s5428_s0 + $0xb8] sm:$0xff] }
 0x151   :  { %2610 = vmatpush1.bf16.msra.mxu0 %v4794_v33  ;;  %2868 = vmatpush1.bf16.msra.mxu1 %v4797_v34  ;;  %v105_v33 = vpack.c.bf16 %v93_v28, %v81_v27  ;;  %v4884_v34 = vld [vmem:[#allocation2 + $0xa00] ss:$16 sps:$4 sm:$0xff]   ;;  %v4971_v28 = vld [vmem:[#allocation2 + $0xbc8] ss:$16 sps:$4 sm:$0xff]  }
 0x152   :  { %2611 = vmatprep.subr.bf16.mxu0 %v4802_v35  ;;  %2869 = vmatprep.subr.bf16.mxu1 %v4805_v36  ;;  %v4887_v35 = vld [vmem:[#allocation2 + $0xa08] ss:$16 sps:$4 sm:$0xff]   ;;  %v4892_v36 = vld [vmem:[#allocation2 + $0xa24] ss:$16 sps:$4 sm:$0xff]   ;;  %v4968_v27 = vld [vmem:[#allocation2 + $0xbc0] ss:$16 sps:$4 sm:$0xff]  }
 0x155   :  { %2612 = vmatpush1.bf16.msra.mxu0 %v4800_v37  ;;  %2870 = vmatpush1.bf16.msra.mxu1 %v4803_v38  ;;  %v4895_v37 = vld [vmem:[#allocation2 + $0xa2c] ss:$16 sps:$4 sm:$0xff]   ;;  %v108_v38 = vpack.c.bf16 %v96_v32, %v84_v31  ;;  %v4974_v31 = vld [vmem:[#allocation2 + $0xbe0] ss:$16 sps:$4 sm:$0xff]   ;;  %v4977_v32 = vld [vmem:[#allocation2 + $0xbe8] ss:$16 sps:$4 sm:$0xff]  }
 0x156   :  { %2613 = vmatprep.subr.bf16.mxu0 %v4808_v39  ;;  %2871 = vmatprep.subr.bf16.mxu1 %v4811_v40  ;;  %v4890_v39 = vld [vmem:[#allocation2 + $0xa20] ss:$16 sps:$4 sm:$0xff]   ;;  %v4893_v40 = vld [vmem:[#allocation2 + $0xa28] ss:$16 sps:$4 sm:$0xff]  }
 0x159   :  { %2614 = vmatpush1.bf16.msra.mxu0 %v4806_v41  ;;  %2872 = vmatpush1.bf16.msra.mxu1 %v4809_v42  ;;  %v4898_v41 = vld [vmem:[#allocation2 + $0xa44] ss:$16 sps:$4 sm:$0xff]   ;;  %v4901_v42 = vld [vmem:[#allocation2 + $0xa4c] ss:$16 sps:$4 sm:$0xff]  }
 0x15a   :  { %2615 = vmatprep.subr.bf16.mxu0 %v4814_v43  ;;  %2873 = vmatprep.subr.bf16.mxu1 %v4817_v44  ;;  %v4896_v43 = vld [vmem:[#allocation2 + $0xa40] ss:$16 sps:$4 sm:$0xff]   ;;  %v4899_v44 = vld [vmem:[#allocation2 + $0xa48] ss:$16 sps:$4 sm:$0xff]  }
 0x15d   :  { %2616 = vmatpush1.bf16.msra.mxu0 %v4812_v45  ;;  %2874 = vmatpush1.bf16.msra.mxu1 %v4815_v46  ;;  %v4904_v45 = vld [vmem:[#allocation2 + $0xa64] ss:$16 sps:$4 sm:$0xff]   ;;  %v4907_v46 = vld [vmem:[#allocation2 + $0xa6c] ss:$16 sps:$4 sm:$0xff]  }
 0x15e   :  { %2617 = vmatprep.subr.bf16.mxu0 %v4820_v47  ;;  %2875 = vmatprep.subr.bf16.mxu1 %v4823_v48  ;;  %v4902_v47 = vld [vmem:[#allocation2 + $0xa60] ss:$16 sps:$4 sm:$0xff]   ;;  %v4905_v48 = vld [vmem:[#allocation2 + $0xa68] ss:$16 sps:$4 sm:$0xff]  }
 0x161   :  { %2618 = vmatpush1.bf16.msra.mxu0 %v4818_v49  ;;  %2876 = vmatpush1.bf16.msra.mxu1 %v4821_v50  ;;  %v4910_v49 = vld [vmem:[#allocation2 + $0xa84] ss:$16 sps:$4 sm:$0xff]   ;;  %v4913_v50 = vld [vmem:[#allocation2 + $0xa8c] ss:$16 sps:$4 sm:$0xff]  }
 0x162   :  { %2619 = vmatprep.subr.bf16.mxu0 %v4826_v51  ;;  %2877 = vmatprep.subr.bf16.mxu1 %v4829_v52  ;;  %v4908_v51 = vld [vmem:[#allocation2 + $0xa80] ss:$16 sps:$4 sm:$0xff]   ;;  %v4911_v52 = vld [vmem:[#allocation2 + $0xa88] ss:$16 sps:$4 sm:$0xff]  }
 0x165   :  { %2620 = vmatpush1.bf16.msra.mxu0 %v4824_v53  ;;  %2878 = vmatpush1.bf16.msra.mxu1 %v4827_v54  ;;  %v4916_v53 = vld [vmem:[#allocation2 + $0xaa4] ss:$16 sps:$4 sm:$0xff]   ;;  %v4919_v54 = vld [vmem:[#allocation2 + $0xaac] ss:$16 sps:$4 sm:$0xff]  }
 0x166   :  { %2621 = vmatprep.subr.bf16.mxu0 %v4832_v55  ;;  %2879 = vmatprep.subr.bf16.mxu1 %v4835_v56  ;;  %v4914_v55 = vld [vmem:[#allocation2 + $0xaa0] ss:$16 sps:$4 sm:$0xff]   ;;  %v4917_v56 = vld [vmem:[#allocation2 + $0xaa8] ss:$16 sps:$4 sm:$0xff]  }
 0x169   :  { %2622 = vmatpush1.bf16.msra.mxu0 %v4830_v57  ;;  %2880 = vmatpush1.bf16.msra.mxu1 %v4833_v58  ;;  %v4922_v57 = vld [vmem:[#allocation2 + $0xac4] ss:$16 sps:$4 sm:$0xff]   ;;  %v4925_v58 = vld [vmem:[#allocation2 + $0xacc] ss:$16 sps:$4 sm:$0xff]  }
 0x16a   :  { %2623 = vmatprep.subr.bf16.mxu0 %v4838_v59  ;;  %2881 = vmatprep.subr.bf16.mxu1 %v4841_v60  ;;  %v4920_v59 = vld [vmem:[#allocation2 + $0xac0] ss:$16 sps:$4 sm:$0xff]   ;;  %v4923_v60 = vld [vmem:[#allocation2 + $0xac8] ss:$16 sps:$4 sm:$0xff]  }
 0x16d   :  { %2624 = vmatpush1.bf16.msra.mxu0 %v4836_v61  ;;  %2882 = vmatpush1.bf16.msra.mxu1 %v4839_v62  ;;  %v4928_v61 = vld [vmem:[#allocation2 + $0xae4] ss:$16 sps:$4 sm:$0xff]   ;;  %v4931_v62 = vld [vmem:[#allocation2 + $0xaec] ss:$16 sps:$4 sm:$0xff]  }
 0x16e   :  { %2625 = vmatprep.subr.bf16.mxu0 %v4844_v63  ;;  %2883 = vmatprep.subr.bf16.mxu1 %v4847_v0  ;;  %v4926_v63 = vld [vmem:[#allocation2 + $0xae0] ss:$16 sps:$4 sm:$0xff]   ;;  %v4929_v0 = vld [vmem:[#allocation2 + $0xae8] ss:$16 sps:$4 sm:$0xff]  }
 0x171   :  { %2626 = vmatpush1.bf16.msra.mxu0 %v4842_v1  ;;  %2884 = vmatpush1.bf16.msra.mxu1 %v4845_v2  ;;  %v4934_v1 = vld [vmem:[#allocation2 + $0xb04] ss:$16 sps:$4 sm:$0xff]   ;;  %v4937_v2 = vld [vmem:[#allocation2 + $0xb0c] ss:$16 sps:$4 sm:$0xff]  }
 0x172   :  { %2627 = vmatprep.subr.bf16.mxu0 %v4850_v3  ;;  %2885 = vmatprep.subr.bf16.mxu1 %v4853_v4  ;;  %v4932_v3 = vld [vmem:[#allocation2 + $0xb00] ss:$16 sps:$4 sm:$0xff]   ;;  %v4935_v4 = vld [vmem:[#allocation2 + $0xb08] ss:$16 sps:$4 sm:$0xff]  }
 0x175   :  { %2628 = vmatpush1.bf16.msra.mxu0 %v4848_v5  ;;  %2886 = vmatpush1.bf16.msra.mxu1 %v4851_v6  ;;  %v4940_v5 = vld [vmem:[#allocation2 + $0xb24] ss:$16 sps:$4 sm:$0xff]   ;;  %v4943_v6 = vld [vmem:[#allocation2 + $0xb2c] ss:$16 sps:$4 sm:$0xff]  }
 0x176   :  { %2629 = vmatprep.subr.bf16.mxu0 %v4856_v7  ;;  %2887 = vmatprep.subr.bf16.mxu1 %v4859_v8  ;;  %v4938_v7 = vld [vmem:[#allocation2 + $0xb20] ss:$16 sps:$4 sm:$0xff]   ;;  %v4941_v8 = vld [vmem:[#allocation2 + $0xb28] ss:$16 sps:$4 sm:$0xff]  }
 0x179   :  { %2630 = vmatpush1.bf16.msra.mxu0 %v4854_v9  ;;  %2888 = vmatpush1.bf16.msra.mxu1 %v4857_v10  ;;  %v4946_v9 = vld [vmem:[#allocation2 + $0xb44] ss:$16 sps:$4 sm:$0xff]   ;;  %v4949_v10 = vld [vmem:[#allocation2 + $0xb4c] ss:$16 sps:$4 sm:$0xff]  }
 0x17a   :  { %2631 = vmatprep.subr.bf16.mxu0 %v4862_v11  ;;  %2889 = vmatprep.subr.bf16.mxu1 %v4865_v12  ;;  %v4944_v11 = vld [vmem:[#allocation2 + $0xb40] ss:$16 sps:$4 sm:$0xff]   ;;  %v4947_v12 = vld [vmem:[#allocation2 + $0xb48] ss:$16 sps:$4 sm:$0xff]  }
 0x17d   :  { %2632 = vmatpush1.bf16.msra.mxu0 %v4860_v13  ;;  %2890 = vmatpush1.bf16.msra.mxu1 %v4863_v14  ;;  %v4952_v13 = vld [vmem:[#allocation2 + $0xb64] ss:$16 sps:$4 sm:$0xff]   ;;  %v4955_v14 = vld [vmem:[#allocation2 + $0xb6c] ss:$16 sps:$4 sm:$0xff]  }
 0x17e   :  { %2633 = vmatprep.subr.bf16.mxu0 %v4868_v15  ;;  %2891 = vmatprep.subr.bf16.mxu1 %v4871_v16  ;;  %v4950_v15 = vld [vmem:[#allocation2 + $0xb60] ss:$16 sps:$4 sm:$0xff]   ;;  %v4953_v16 = vld [vmem:[#allocation2 + $0xb68] ss:$16 sps:$4 sm:$0xff]  }
 0x181   :  { %2634 = vmatpush1.bf16.msra.mxu0 %v4866_v17  ;;  %2892 = vmatpush1.bf16.msra.mxu1 %v4869_v18  ;;  %v4958_v17 = vld [vmem:[#allocation2 + $0xb84] ss:$16 sps:$4 sm:$0xff]   ;;  %v4961_v18 = vld [vmem:[#allocation2 + $0xb8c] ss:$16 sps:$4 sm:$0xff]  }
 0x182   :  { %2635 = vmatprep.subr.bf16.mxu0 %v4874_v19  ;;  %2893 = vmatprep.subr.bf16.mxu1 %v4877_v20  ;;  %v4956_v19 = vld [vmem:[#allocation2 + $0xb80] ss:$16 sps:$4 sm:$0xff]   ;;  %v4959_v20 = vld [vmem:[#allocation2 + $0xb88] ss:$16 sps:$4 sm:$0xff]  }
 0x185   :  { %2636 = vmatpush1.bf16.msra.mxu0 %v4872_v21  ;;  %2894 = vmatpush1.bf16.msra.mxu1 %v4875_v22  ;;  %v4964_v21 = vld [vmem:[#allocation2 + $0xba4] ss:$16 sps:$4 sm:$0xff]   ;;  %v4967_v22 = vld [vmem:[#allocation2 + $0xbac] ss:$16 sps:$4 sm:$0xff]  }
 0x186   :  { %2637 = vmatprep.subr.bf16.mxu0 %v4880_v23  ;;  %2895 = vmatprep.subr.bf16.mxu1 %v4883_v24  ;;  %v4962_v23 = vld [vmem:[#allocation2 + $0xba0] ss:$16 sps:$4 sm:$0xff]   ;;  %v4965_v24 = vld [vmem:[#allocation2 + $0xba8] ss:$16 sps:$4 sm:$0xff]  }
 0x189   :  { %2638 = vmatpush1.bf16.msra.mxu0 %v4878_v25  ;;  %2896 = vmatpush1.bf16.msra.mxu1 %v4881_v26  ;;  %v4970_v25 = vld [vmem:[#allocation2 + $0xbc4] ss:$16 sps:$4 sm:$0xff]   ;;  %v4973_v26 = vld [vmem:[#allocation2 + $0xbcc] ss:$16 sps:$4 sm:$0xff]  }
 0x18a   :  { %2650 = vmatprep.subr.bf16.mxu0 %v4886_v29  ;;  %2908 = vmatprep.subr.bf16.mxu1 %v4889_v30  ;;  %v4976_v29 = vld [vmem:[#allocation2 + $0xbe4] ss:$16 sps:$4 sm:$0xff]   ;;  %v4979_v30 = vld [vmem:[#allocation2 + $0xbec] ss:$16 sps:$4 sm:$0xff]  }
 0x18c   :  { %2640 = vmatmul.mubr.bf16.vlgmr.msra.gmra.mrb[0].mxu0 %v105_v33  ;;  %2898 = vmatmul.mubr.bf16.vlgmr.msra.gmra.mrb[0].mxu1 %v105_v33  ;;  %v83_v33 = vld [vmem:[%s5428_s0 + $0x50] sm:$0xff] }
 0x18d   :  { %2651 = vmatpush1.bf16.msra.mxu0 %v4884_v34  ;;  %2909 = vmatpush1.bf16.msra.mxu1 %v4887_v35  ;;  %v95_v34 = vld [vmem:[%s5428_s0 + $0xb0] sm:$0xff]  ;;  %s5234_s0 = smov [#allocation10]  }
 0x18e   :  { %2652 = vmatprep.subr.bf16.mxu0 %v4892_v36  ;;  %2910 = vmatprep.subr.bf16.mxu1 %v4895_v37  ;;  %v4982_v35 = vld [vmem:[#allocation7 + $0x4] ss:$12 sps:$4 sm:$0xff]   ;;  %v5007_v36 = vld [vmem:[#allocation7 + $0xc8] ss:$12 sps:$4 sm:$0xff]   ;;  %v107_v37 = vpack.c.bf16 %v95_v34, %v83_v33  ;;  %s3799_s9 = sshll.u32 %s5234_s0, 4  ;;  %s3800_s9 = int_to_ptr.vmem [resolvable:$true] %s3799_s9 }
 0x18f   :  { %2682 = vmatprep.mubr.bf16.mxu0 %v108_v38  ;;  %2940 = vmatprep.mubr.bf16.mxu1 %v108_v38  ;;  %v4980_v38 = vld [vmem:[#allocation7] ss:$12 sps:$4 sm:$0xff]   ;;  %s5196_s10 = scalar_lea.vmem %s3800_s9, 768  ;;  %p5201_p5 = scmp.lt.s32.totalorder %s3800_s9, %s3800_s9 }
 0x190   :  { %p5197_p4 = scmp.ne.s32.totalorder %s3800_s9, %s5196_s10  ;;  %p5202_p6 = scmp.lt.s32.totalorder %s5196_s10, %s5196_s10 }
 0x191   :  { %2653 = vmatpush1.bf16.msra.mxu0 %v4890_v39  ;;  %2911 = vmatpush1.bf16.msra.mxu1 %v4893_v40  ;;  %v5008_v39 = vld [vmem:[#allocation7 + $0x8] ss:$12 sps:$4 sm:$0xff]  }
 0x192   :  { %2654 = vmatprep.subr.bf16.mxu0 %v4898_v41  ;;  %2912 = vmatprep.subr.bf16.mxu1 %v4901_v42  ;;  %v4985_v40 = vld [vmem:[#allocation7 + $0x1c] ss:$12 sps:$4 sm:$0xff]   ;;  %v5012_v41 = vld [vmem:[#allocation7 + $0xe0] ss:$12 sps:$4 sm:$0xff]   ;;  %v4983_v42 = vld [vmem:[#allocation7 + $0x18] ss:$12 sps:$4 sm:$0xff]   ;;  %p5203_p7 = por %p5202_p6, %p5201_p5 }
 0x194   :  { %p5204_p8 = pnand %p5203_p7, %p5197_p4 }
 0x195   :  { %2655 = vmatpush1.bf16.msra.mxu0 %v4896_v43  ;;  %2913 = vmatpush1.bf16.msra.mxu1 %v4899_v44  ;;  %v5013_v43 = vld [vmem:[#allocation7 + $0x20] ss:$12 sps:$4 sm:$0xff]  }
 0x196   :  { %2656 = vmatprep.subr.bf16.mxu0 %v4904_v45  ;;  %2914 = vmatprep.subr.bf16.mxu1 %v4907_v46  ;;  %v4988_v44 = vld [vmem:[#allocation7 + $0x34] ss:$12 sps:$4 sm:$0xff]   ;;  %v5017_v45 = vld [vmem:[#allocation7 + $0xf8] ss:$12 sps:$4 sm:$0xff]   ;;  %v4986_v46 = vld [vmem:[#allocation7 + $0x30] ss:$12 sps:$4 sm:$0xff]  }
 0x199   :  { %2657 = vmatpush1.bf16.msra.mxu0 %v4902_v47  ;;  %2915 = vmatpush1.bf16.msra.mxu1 %v4905_v48  ;;  %v5018_v47 = vld [vmem:[#allocation7 + $0x38] ss:$12 sps:$4 sm:$0xff]  }
 0x19a   :  { %2658 = vmatprep.subr.bf16.mxu0 %v4910_v49  ;;  %2916 = vmatprep.subr.bf16.mxu1 %v4913_v50  ;;  %v4991_v48 = vld [vmem:[#allocation7 + $0x4c] ss:$12 sps:$4 sm:$0xff]   ;;  %v5022_v49 = vld [vmem:[#allocation7 + $0x110] ss:$12 sps:$4 sm:$0xff]   ;;  %v4989_v50 = vld [vmem:[#allocation7 + $0x48] ss:$12 sps:$4 sm:$0xff]  }
 0x19d   :  { %2659 = vmatpush1.bf16.msra.mxu0 %v4908_v51  ;;  %2917 = vmatpush1.bf16.msra.mxu1 %v4911_v52  ;;  %v5023_v51 = vld [vmem:[#allocation7 + $0x50] ss:$12 sps:$4 sm:$0xff]  }
 0x19e   :  { %2660 = vmatprep.subr.bf16.mxu0 %v4916_v53  ;;  %2918 = vmatprep.subr.bf16.mxu1 %v4919_v54  ;;  %v4994_v52 = vld [vmem:[#allocation7 + $0x64] ss:$12 sps:$4 sm:$0xff]   ;;  %v5027_v53 = vld [vmem:[#allocation7 + $0x128] ss:$12 sps:$4 sm:$0xff]   ;;  %v4992_v54 = vld [vmem:[#allocation7 + $0x60] ss:$12 sps:$4 sm:$0xff]  }
 0x1a1   :  { %2661 = vmatpush1.bf16.msra.mxu0 %v4914_v55  ;;  %2919 = vmatpush1.bf16.msra.mxu1 %v4917_v56  ;;  %v5028_v55 = vld [vmem:[#allocation7 + $0x68] ss:$12 sps:$4 sm:$0xff]  }
 0x1a2   :  { %2662 = vmatprep.subr.bf16.mxu0 %v4922_v57  ;;  %2920 = vmatprep.subr.bf16.mxu1 %v4925_v58  ;;  %v4997_v56 = vld [vmem:[#allocation7 + $0x7c] ss:$12 sps:$4 sm:$0xff]   ;;  %v5032_v57 = vld [vmem:[#allocation7 + $0x140] ss:$12 sps:$4 sm:$0xff]   ;;  %v4995_v58 = vld [vmem:[#allocation7 + $0x78] ss:$12 sps:$4 sm:$0xff]  }
 0x1a5   :  { %2663 = vmatpush1.bf16.msra.mxu0 %v4920_v59  ;;  %2921 = vmatpush1.bf16.msra.mxu1 %v4923_v60  ;;  %v5033_v59 = vld [vmem:[#allocation7 + $0x80] ss:$12 sps:$4 sm:$0xff]  }
 0x1a6   :  { %2664 = vmatprep.subr.bf16.mxu0 %v4928_v61  ;;  %2922 = vmatprep.subr.bf16.mxu1 %v4931_v62  ;;  %v5000_v60 = vld [vmem:[#allocation7 + $0x94] ss:$12 sps:$4 sm:$0xff]   ;;  %v4998_v61 = vld [vmem:[#allocation7 + $0x90] ss:$12 sps:$4 sm:$0xff]   ;;  %v5003_v62 = vld [vmem:[#allocation7 + $0xac] ss:$12 sps:$4 sm:$0xff]  }
 0x1a9   :  { %2665 = vmatpush1.bf16.msra.mxu0 %v4926_v63  ;;  %2923 = vmatpush1.bf16.msra.mxu1 %v4929_v0  ;;  %v5001_v63 = vld [vmem:[#allocation7 + $0xa8] ss:$12 sps:$4 sm:$0xff]   ;;  %v5006_v0 = vld [vmem:[#allocation7 + $0xc4] ss:$12 sps:$4 sm:$0xff]  }
 0x1aa   :  { %2666 = vmatprep.subr.bf16.mxu0 %v4934_v1  ;;  %2924 = vmatprep.subr.bf16.mxu1 %v4937_v2  ;;  %v5004_v1 = vld [vmem:[#allocation7 + $0xc0] ss:$12 sps:$4 sm:$0xff]   ;;  %v5011_v2 = vld [vmem:[#allocation7 + $0xdc] ss:$12 sps:$4 sm:$0xff]  }
 0x1ad   :  { %2667 = vmatpush1.bf16.msra.mxu0 %v4932_v3  ;;  %2925 = vmatpush1.bf16.msra.mxu1 %v4935_v4  ;;  %v5009_v3 = vld [vmem:[#allocation7 + $0xd8] ss:$12 sps:$4 sm:$0xff]   ;;  %v5016_v4 = vld [vmem:[#allocation7 + $0xf4] ss:$12 sps:$4 sm:$0xff]  }
 0x1ae   :  { %2668 = vmatprep.subr.bf16.mxu0 %v4940_v5  ;;  %2926 = vmatprep.subr.bf16.mxu1 %v4943_v6  ;;  %v5014_v5 = vld [vmem:[#allocation7 + $0xf0] ss:$12 sps:$4 sm:$0xff]   ;;  %v5021_v6 = vld [vmem:[#allocation7 + $0x10c] ss:$12 sps:$4 sm:$0xff]  }
 0x1b1   :  { %2669 = vmatpush1.bf16.msra.mxu0 %v4938_v7  ;;  %2927 = vmatpush1.bf16.msra.mxu1 %v4941_v8  ;;  %v5019_v7 = vld [vmem:[#allocation7 + $0x108] ss:$12 sps:$4 sm:$0xff]   ;;  %v5026_v8 = vld [vmem:[#allocation7 + $0x124] ss:$12 sps:$4 sm:$0xff]  }
 0x1b2   :  { %2670 = vmatprep.subr.bf16.mxu0 %v4946_v9  ;;  %2928 = vmatprep.subr.bf16.mxu1 %v4949_v10  ;;  %v5024_v9 = vld [vmem:[#allocation7 + $0x120] ss:$12 sps:$4 sm:$0xff]   ;;  %v5031_v10 = vld [vmem:[#allocation7 + $0x13c] ss:$12 sps:$4 sm:$0xff]  }
 0x1b5   :  { %2671 = vmatpush1.bf16.msra.mxu0 %v4944_v11  ;;  %2929 = vmatpush1.bf16.msra.mxu1 %v4947_v12  ;;  %v5029_v11 = vld [vmem:[#allocation7 + $0x138] ss:$12 sps:$4 sm:$0xff]   ;;  %v5036_v12 = vld [vmem:[#allocation7 + $0x154] ss:$12 sps:$4 sm:$0xff]  }
 0x1b6   :  { %2672 = vmatprep.subr.bf16.mxu0 %v4952_v13  ;;  %2930 = vmatprep.subr.bf16.mxu1 %v4955_v14  ;;  %v5037_v13 = vld [vmem:[#allocation7 + $0x158] ss:$12 sps:$4 sm:$0xff]   ;;  %v5034_v14 = vld [vmem:[#allocation7 + $0x150] ss:$12 sps:$4 sm:$0xff]  }
 0x1b9   :  { %2673 = vmatpush1.bf16.msra.mxu0 %v4950_v15  ;;  %2931 = vmatpush1.bf16.msra.mxu1 %v4953_v16  ;;  %v5038_v15 = vld [vmem:[#allocation7 + $0x98] ss:$12 sps:$4 sm:$0xff]  }
 0x1ba   :  { %2674 = vmatprep.subr.bf16.mxu0 %v4958_v17  ;;  %2932 = vmatprep.subr.bf16.mxu1 %v4961_v18  ;;  %v5041_v16 = vld [vmem:[#allocation7 + $0x16c] ss:$12 sps:$4 sm:$0xff]   ;;  %v5042_v17 = vld [vmem:[#allocation7 + $0x170] ss:$12 sps:$4 sm:$0xff]   ;;  %v5039_v18 = vld [vmem:[#allocation7 + $0x168] ss:$12 sps:$4 sm:$0xff]  }
 0x1bd   :  { %2675 = vmatpush1.bf16.msra.mxu0 %v4956_v19  ;;  %2933 = vmatpush1.bf16.msra.mxu1 %v4959_v20  ;;  %v5043_v19 = vld [vmem:[#allocation7 + $0xb0] ss:$12 sps:$4 sm:$0xff]  }
 0x1be   :  { %2676 = vmatprep.subr.bf16.mxu0 %v4964_v21  ;;  %2934 = vmatprep.subr.bf16.mxu1 %v4967_v22  ;;  %v5046_v20 = vld [vmem:[#allocation7 + $0x184] ss:$12 sps:$4 sm:$0xff]   ;;  %v5047_v21 = vld [vmem:[#allocation7 + $0x248] ss:$12 sps:$4 sm:$0xff]   ;;  %v495_v22 = vlaneseq }
 0x1c1   :  { %2677 = vmatpush1.bf16.msra.mxu0 %v4962_v23  ;;  %2935 = vmatpush1.bf16.msra.mxu1 %v4965_v24  ;;  %v5394_v23 = vshrl.u32 %v495_v22, 7  ;;  %v5078_v22 = vld [vmem:[#allocation7 + $0x218] ss:$12 sps:$4 sm:$0xff]  }
 0x1c2   :  { %2678 = vmatprep.subr.bf16.mxu0 %v4970_v25  ;;  %2936 = vmatprep.subr.bf16.mxu1 %v4973_v26  ;;  %v493_v26 = vld [vmem:[#allocation5] sm:$0xf] }
 0x1c3   :  { %v497_v24 = vsub.s32 0, %v5394_v23  ;;  %v505_v25 = vsub.s32 2, %v5394_v23 }
 0x1c5   :  { %2679 = vmatpush1.bf16.msra.mxu0 %v4968_v27  ;;  %2937 = vmatpush1.bf16.msra.mxu1 %v4971_v28  ;;  %v501_v27 = vsub.s32 1, %v5394_v23  ;;  %v509_v28 = vsub.s32 3, %v5394_v23 }
 0x1c6   :  { %2680 = vmatprep.subr.bf16.mxu0 %v4976_v29  ;;  %2938 = vmatprep.subr.bf16.mxu1 %v4979_v30  ;;  %v498_v29 = vrot.slane %v493_v26, %v497_v24  ;;  %v506_v30 = vrot.slane %v493_v26, %v505_v25 }
 0x1c9   :  { %2681 = vmatpush1.bf16.msra.mxu0 %v4974_v31  ;;  %2939 = vmatpush1.bf16.msra.mxu1 %v4977_v32  ;;  %v502_v31 = vrot.slane %v493_v26, %v501_v27  ;;  %v510_v32 = vrot.slane %v493_v26, %v509_v28  ;;  %v5081_v26 = vld [vmem:[#allocation7 + $0x22c] ss:$12 sps:$4 sm:$0xff]   ;;  %v5082_v28 = vld [vmem:[#allocation7 + $0x2f0] ss:$12 sps:$4 sm:$0xff]  }
 0x1ca   :  { %3620 = vmatprep.subr.bf16.mxu0 %v4982_v35  ;;  %4293 = vmatprep.subr.bf16.mxu1 %v5007_v36 }
 0x1cc   :  { %2683 = vmatmul.mubr.bf16.vlgmr.msra.gmra.mrb[0].mxu0 %v107_v37  ;;  %2941 = vmatmul.mubr.bf16.vlgmr.msra.gmra.mrb[0].mxu1 %v107_v37 }
 0x1cd   :  { %3621 = vmatpush1.bf16.msra.mxu0 %v4980_v38  ;;  %4294 = vmatpush3.bf16.msra.mxu1 %v5008_v39 }
 0x1ce   :  { %3622 = vmatprep.subr.bf16.mxu0 %v4985_v40  ;;  %4295 = vmatprep.subr.bf16.mxu1 %v5012_v41 }
 0x1d1   :  { %3623 = vmatpush1.bf16.msra.mxu0 %v4983_v42  ;;  %4296 = vmatpush3.bf16.msra.mxu1 %v5013_v43 }
 0x1d2   :  { %3624 = vmatprep.subr.bf16.mxu0 %v4988_v44  ;;  %4297 = vmatprep.subr.bf16.mxu1 %v5017_v45 }
 0x1d5   :  { %3625 = vmatpush1.bf16.msra.mxu0 %v4986_v46  ;;  %4298 = vmatpush3.bf16.msra.mxu1 %v5018_v47 }
 0x1d6   :  { %3626 = vmatprep.subr.bf16.mxu0 %v4991_v48  ;;  %4299 = vmatprep.subr.bf16.mxu1 %v5022_v49 }
 0x1d9   :  { %3627 = vmatpush1.bf16.msra.mxu0 %v4989_v50  ;;  %4300 = vmatpush3.bf16.msra.mxu1 %v5023_v51 }
 0x1da   :  { %3628 = vmatprep.subr.bf16.mxu0 %v4994_v52  ;;  %4301 = vmatprep.subr.bf16.mxu1 %v5027_v53 }
 0x1dd   :  { %3629 = vmatpush1.bf16.msra.mxu0 %v4992_v54  ;;  %4302 = vmatpush3.bf16.msra.mxu1 %v5028_v55 }
 0x1de   :  { %3630 = vmatprep.subr.bf16.mxu0 %v4997_v56  ;;  %4303 = vmatprep.subr.bf16.mxu1 %v5032_v57 }
 0x1e1   :  { %3631 = vmatpush1.bf16.msra.mxu0 %v4995_v58  ;;  %4304 = vmatpush3.bf16.msra.mxu1 %v5033_v59 }
 0x1e2   :  { %3632 = vmatprep.subr.bf16.mxu0 %v5000_v60  ;;  %4305 = vmatprep.subr.bf16.mxu1 %v5037_v13  ;;  %v5064_v13 = vld [vmem:[#allocation7 + $0x1e0] ss:$12 sps:$4 sm:$0xff]  }
 0x1e5   :  { %3633 = vmatpush1.bf16.msra.mxu0 %v4998_v61  ;;  %4306 = vmatpush3.bf16.msra.mxu1 %v5038_v15  ;;  %v5044_v61 = vld [vmem:[#allocation7 + $0x180] ss:$12 sps:$4 sm:$0xff]   ;;  %v5071_v15 = vld [vmem:[#allocation7 + $0x1fc] ss:$12 sps:$4 sm:$0xff]  }
 0x1e6   :  { %3634 = vmatprep.subr.bf16.mxu0 %v5003_v62  ;;  %4307 = vmatprep.subr.bf16.mxu1 %v5042_v17  ;;  %v5048_v62 = vld [vmem:[#allocation7 + $0x188] ss:$12 sps:$4 sm:$0xff]   ;;  %v5069_v17 = vld [vmem:[#allocation7 + $0x1f8] ss:$12 sps:$4 sm:$0xff]  }
 0x1e9   :  { %3635 = vmatpush1.bf16.msra.mxu0 %v5001_v63  ;;  %4308 = vmatpush3.bf16.msra.mxu1 %v5043_v19  ;;  %v5051_v63 = vld [vmem:[#allocation7 + $0x19c] ss:$12 sps:$4 sm:$0xff]   ;;  %v5076_v19 = vld [vmem:[#allocation7 + $0x214] ss:$12 sps:$4 sm:$0xff]  }
 0x1ea   :  { %3636 = vmatprep.subr.bf16.mxu0 %v5006_v0  ;;  %4315 = vmatprep.subr.bf16.mxu1 %v5047_v21  ;;  %v5052_v0 = vld [vmem:[#allocation7 + $0x260] ss:$12 sps:$4 sm:$0xff]   ;;  %v5074_v21 = vld [vmem:[#allocation7 + $0x210] ss:$12 sps:$4 sm:$0xff]  }
 0x1ed   :  { %3637 = vmatpush1.bf16.msra.mxu0 %v5004_v1  ;;  %v5049_v1 = vld [vmem:[#allocation7 + $0x198] ss:$12 sps:$4 sm:$0xff]  }
 0x1ee   :  { %3638 = vmatprep.subr.bf16.mxu0 %v5011_v2  ;;  %v5053_v2 = vld [vmem:[#allocation7 + $0x1a0] ss:$12 sps:$4 sm:$0xff]  }
 0x1f1   :  { %3639 = vmatpush1.bf16.msra.mxu0 %v5009_v3  ;;  %v5056_v3 = vld [vmem:[#allocation7 + $0x1b4] ss:$12 sps:$4 sm:$0xff]  }
 0x1f2   :  { %3640 = vmatprep.subr.bf16.mxu0 %v5016_v4  ;;  %v5057_v4 = vld [vmem:[#allocation7 + $0x278] ss:$12 sps:$4 sm:$0xff]  }
 0x1f5   :  { %3641 = vmatpush1.bf16.msra.mxu0 %v5014_v5  ;;  %v5054_v5 = vld [vmem:[#allocation7 + $0x1b0] ss:$12 sps:$4 sm:$0xff]  }
 0x1f6   :  { %3642 = vmatprep.subr.bf16.mxu0 %v5021_v6  ;;  %v5058_v6 = vld [vmem:[#allocation7 + $0x1b8] ss:$12 sps:$4 sm:$0xff]  }
 0x1f9   :  { %3643 = vmatpush1.bf16.msra.mxu0 %v5019_v7  ;;  %v5061_v7 = vld [vmem:[#allocation7 + $0x1cc] ss:$12 sps:$4 sm:$0xff]  }
 0x1fa   :  { %3644 = vmatprep.subr.bf16.mxu0 %v5026_v8  ;;  %v5062_v8 = vld [vmem:[#allocation7 + $0x290] ss:$12 sps:$4 sm:$0xff]  }
 0x1fd   :  { %3645 = vmatpush1.bf16.msra.mxu0 %v5024_v9  ;;  %v5059_v9 = vld [vmem:[#allocation7 + $0x1c8] ss:$12 sps:$4 sm:$0xff]  }
 0x1fe   :  { %3646 = vmatprep.subr.bf16.mxu0 %v5031_v10  ;;  %v5063_v10 = vld [vmem:[#allocation7 + $0x1d0] ss:$12 sps:$4 sm:$0xff]  }
 0x201   :  { %3647 = vmatpush1.bf16.msra.mxu0 %v5029_v11  ;;  %v5066_v11 = vld [vmem:[#allocation7 + $0x1e4] ss:$12 sps:$4 sm:$0xff]  }
 0x202   :  { %3648 = vmatprep.subr.bf16.mxu0 %v5036_v12  ;;  %v5067_v12 = vld [vmem:[#allocation7 + $0x2a8] ss:$12 sps:$4 sm:$0xff]  }
 0x205   :  { %3649 = vmatpush1.bf16.msra.mxu0 %v5034_v14  ;;  %v5068_v14 = vld [vmem:[#allocation7 + $0x1e8] ss:$12 sps:$4 sm:$0xff]  }
 0x206   :  { %3650 = vmatprep.subr.bf16.mxu0 %v5041_v16  ;;  %v5072_v16 = vld [vmem:[#allocation7 + $0x2c0] ss:$12 sps:$4 sm:$0xff]  }
 0x209   :  { %3651 = vmatpush1.bf16.msra.mxu0 %v5039_v18  ;;  %v5073_v18 = vld [vmem:[#allocation7 + $0x200] ss:$12 sps:$4 sm:$0xff]  }
 0x20a   :  { %3663 = vmatprep.subr.bf16.mxu0 %v5046_v20  ;;  %v5077_v20 = vld [vmem:[#allocation7 + $0x2d8] ss:$12 sps:$4 sm:$0xff]  }
 0x29f   :  { %v2684_v33 = vpop.f32.mrb[0].mxu0  ;;  %v2942_v34 = vpop.f32.mrb[0].mxu1 }
 0x2a0   :  { %v4337_v35 = vadd.f32 %v2684_v33, %v498_v29  ;;  %v4341_v36 = vadd.f32 %v2942_v34, %v506_v30  ;;  %v2686_v37 = vpop.f32.mrb[1].mxu0  ;;  %v2944_v38 = vpop.f32.mrb[1].mxu1  ;;  %v5089_v33 = vld [vmem:[#allocation7 + $0x25c] ss:$12 sps:$4 sm:$0xff]   ;;  %v5087_v34 = vld [vmem:[#allocation7 + $0x258] ss:$12 sps:$4 sm:$0xff]  }
 0x2a1   :  { %v4338_v39 = vadd.f32 %v2686_v37, %v502_v31  ;;  %v4342_v40 = vadd.f32 %v2944_v38, %v510_v32  ;;  %v2688_v41 = vpop.f32.mrb[2].mxu0  ;;  %v2946_v42 = vpop.f32.mrb[2].mxu1  ;;  %v5095_v37 = vld [vmem:[#allocation7 + $0x28c] ss:$12 sps:$4 sm:$0xff]   ;;  %v5093_v38 = vld [vmem:[#allocation7 + $0x288] ss:$12 sps:$4 sm:$0xff]  }
 0x2a2   :  { %v4339_v43 = vadd.f32 %v2688_v41, %v498_v29  ;;  %v4343_v44 = vadd.f32 %v2946_v42, %v506_v30  ;;  %v2690_v45 = vpop.f32.mrb[3].mxu0  ;;  %v2948_v46 = vpop.f32.mrb[3].mxu1  ;;  %v2951_v49 = vmax.f32 %v4337_v35, 0.0  ;;  %v2953_v50 = vmax.f32 %v4341_v36, 0.0  ;;  %v5079_v29 = vld [vmem:[#allocation7 + $0x228] ss:$12 sps:$4 sm:$0xff]  }
 0x2a3   :  { %v4340_v47 = vadd.f32 %v2690_v45, %v502_v31  ;;  %v4344_v48 = vadd.f32 %v2948_v46, %v510_v32  ;;  %v2952_v53 = vmax.f32 %v4338_v39, 0.0  ;;  %v2954_v54 = vmax.f32 %v4342_v40, 0.0  ;;  %v5083_v30 = vld [vmem:[#allocation7 + $0x230] ss:$12 sps:$4 sm:$0xff]   ;;  %v5084_v32 = vld [vmem:[#allocation7 + $0x240] ss:$12 sps:$4 sm:$0xff]  }
 0x2a4   :  { %v2955_v51 = vmax.f32 %v4339_v43, 0.0  ;;  %v2957_v52 = vmax.f32 %v4343_v44, 0.0  ;;  %v5086_v31 = vld [vmem:[#allocation7 + $0x244] ss:$12 sps:$4 sm:$0xff]   ;;  %v5092_v35 = vld [vmem:[#allocation7 + $0x274] ss:$12 sps:$4 sm:$0xff]  }
 0x2a5   :  { %v2956_v55 = vmax.f32 %v4340_v47, 0.0  ;;  %v2958_v56 = vmax.f32 %v4344_v48, 0.0  ;;  %v5090_v36 = vld [vmem:[#allocation7 + $0x270] ss:$12 sps:$4 sm:$0xff]   ;;  %v5096_v40 = vld [vmem:[#allocation7 + $0x2a0] ss:$12 sps:$4 sm:$0xff]  }
 0x2a6   :  { %v2959_v57 = vpack.c.bf16 %v2955_v51, %v2951_v49  ;;  %v5406_v58 = vpack.c.bf16 %v2957_v52, %v2953_v50  ;;  %v5098_v39 = vld [vmem:[#allocation7 + $0x2a4] ss:$12 sps:$4 sm:$0xff]   ;;  %v5101_v41 = vld [vmem:[#allocation7 + $0x2bc] ss:$12 sps:$4 sm:$0xff]   ;;  %v5104_v43 = vld [vmem:[#allocation7 + $0x2d4] ss:$12 sps:$4 sm:$0xff]  }
 0x2a7   :  { %v2960_v59 = vpack.c.bf16 %v2956_v55, %v2952_v53  ;;  %v2962_v60 = vpack.c.bf16 %v2958_v56, %v2954_v54  ;;  %v5099_v42 = vld [vmem:[#allocation7 + $0x2b8] ss:$12 sps:$4 sm:$0xff]   ;;  %v5102_v44 = vld [vmem:[#allocation7 + $0x2d0] ss:$12 sps:$4 sm:$0xff]   ;;  %v5105_v46 = vld [vmem:[#allocation7 + $0x2e8] ss:$12 sps:$4 sm:$0xff]  }
 0x2a8   :  { %v5107_v45 = vld [vmem:[#allocation7 + $0x2ec] ss:$12 sps:$4 sm:$0xff]   ;;  %v3091_v53 = vld [vmem:[#allocation8] sm:$0x7] }
 0x2a9   :  { %3652 = vmatprep.mubr.bf16.mxu0 %v2960_v59  ;;  %3738 = vmatprep.mubr.bf16.mxu1 %v2960_v59  ;;  %v3104_v54 = vrot.slane %v3091_v53, %v505_v25 }
 0x2aa   :  { %3653 = vmatmul.mubr.bf16.vlgmr.msra.gmra.mrb[4].mxu0 %v2959_v57  ;;  %3739 = vmatmul.mubr.bf16.vlgmr.msra.gmra.mrb[4].mxu1 %v2959_v57 }
 0x2ab   :  { %3664 = vmatpush1.bf16.msra.mxu0 %v5044_v61  ;;  %4316 = vmatpush3.bf16.msra.mxu1 %v5048_v62 }
 0x2ac   :  { %3695 = vmatprep.mubr.bf16.mxu0 %v2962_v60  ;;  %3779 = vmatprep.mubr.bf16.mxu1 %v2962_v60 }
 0x2ad   :  { %3665 = vmatprep.subr.bf16.mxu0 %v5051_v63  ;;  %4317 = vmatprep.subr.bf16.mxu1 %v5052_v0 }
 0x2af   :  { %3666 = vmatpush1.bf16.msra.mxu0 %v5049_v1  ;;  %4318 = vmatpush3.bf16.msra.mxu1 %v5053_v2  ;;  %v3096_v1 = vrot.slane %v3091_v53, %v497_v24  ;;  %v3100_v2 = vrot.slane %v3091_v53, %v501_v27 }
 0x2b0   :  { %3667 = vmatprep.subr.bf16.mxu0 %v5056_v3  ;;  %4319 = vmatprep.subr.bf16.mxu1 %v5057_v4 }
 0x2b3   :  { %3668 = vmatpush1.bf16.msra.mxu0 %v5054_v5  ;;  %4320 = vmatpush3.bf16.msra.mxu1 %v5058_v6 }
 0x2b4   :  { %3669 = vmatprep.subr.bf16.mxu0 %v5061_v7  ;;  %4321 = vmatprep.subr.bf16.mxu1 %v5062_v8 }
 0x2b7   :  { %3670 = vmatpush1.bf16.msra.mxu0 %v5059_v9  ;;  %4322 = vmatpush3.bf16.msra.mxu1 %v5063_v10 }
 0x2b8   :  { %3671 = vmatprep.subr.bf16.mxu0 %v5066_v11  ;;  %4323 = vmatprep.subr.bf16.mxu1 %v5067_v12 }
 0x2bb   :  { %3672 = vmatpush1.bf16.msra.mxu0 %v5064_v13  ;;  %4324 = vmatpush3.bf16.msra.mxu1 %v5068_v14 }
 0x2bc   :  { %3673 = vmatprep.subr.bf16.mxu0 %v5071_v15  ;;  %4325 = vmatprep.subr.bf16.mxu1 %v5072_v16 }
 0x2bf   :  { %3674 = vmatpush1.bf16.msra.mxu0 %v5069_v17  ;;  %4326 = vmatpush3.bf16.msra.mxu1 %v5073_v18 }
 0x2c0   :  { %3675 = vmatprep.subr.bf16.mxu0 %v5076_v19  ;;  %4327 = vmatprep.subr.bf16.mxu1 %v5077_v20 }
 0x2c3   :  { %3676 = vmatpush1.bf16.msra.mxu0 %v5074_v21  ;;  %4328 = vmatpush3.bf16.msra.mxu1 %v5078_v22 }
 0x2c4   :  { %3677 = vmatprep.subr.bf16.mxu0 %v5081_v26  ;;  %4329 = vmatprep.subr.bf16.mxu1 %v5082_v28 }
 0x2c7   :  { %3678 = vmatpush1.bf16.msra.mxu0 %v5079_v29  ;;  %4330 = vmatpush3.bf16.msra.mxu1 %v5083_v30 }
 0x2c8   :  { %3679 = vmatprep.subr.bf16.mxu0 %v5086_v31 }
 0x2ca   :  { %3780 = vmatmul.mubr.bf16.vlgmr.msra.gmra.mrb[8].mxu1 %v5406_v58 }
 0x2cb   :  { %3680 = vmatpush1.bf16.msra.mxu0 %v5084_v32 }
 0x2cc   :  { %3681 = vmatprep.subr.bf16.mxu0 %v5089_v33 }
 0x2cf   :  { %3682 = vmatpush1.bf16.msra.mxu0 %v5087_v34 }
 0x2d0   :  { %3683 = vmatprep.subr.bf16.mxu0 %v5092_v35 }
 0x2d3   :  { %3684 = vmatpush1.bf16.msra.mxu0 %v5090_v36 }
 0x2d4   :  { %3685 = vmatprep.subr.bf16.mxu0 %v5095_v37 }
 0x2d7   :  { %3686 = vmatpush1.bf16.msra.mxu0 %v5093_v38 }
 0x2d8   :  { %3687 = vmatprep.subr.bf16.mxu0 %v5098_v39 }
 0x2db   :  { %3688 = vmatpush1.bf16.msra.mxu0 %v5096_v40 }
 0x2dc   :  { %3689 = vmatprep.subr.bf16.mxu0 %v5101_v41 }
 0x2df   :  { %3690 = vmatpush1.bf16.msra.mxu0 %v5099_v42 }
 0x2e0   :  { %3691 = vmatprep.subr.bf16.mxu0 %v5104_v43 }
 0x2e3   :  { %3692 = vmatpush1.bf16.msra.mxu0 %v5102_v44 }
 0x2e4   :  { %3693 = vmatprep.subr.bf16.mxu0 %v5107_v45 }
 0x2e7   :  { %3694 = vmatpush1.bf16.msra.mxu0 %v5105_v46 }
 0x2ea   :  { %3696 = vmatmul.mubr.bf16.vlgmr.msra.gmra.mrb[4].mxu0 %v5406_v58 }
 0x37d   :  { %v4309_v47 = vpop.f32.mrb[4].mxu1 }
 0x37e   :  { %v4310_v48 = vpop.f32.mrb[5].mxu1 }
 0x37f   :  { %v4311_v49 = vadd.f32 %v4310_v48, %v4309_v47  ;;  %v4312_v50 = vpop.f32.mrb[6].mxu1 }
 0x380   :  { %v4313_v51 = vpop.f32.mrb[7].mxu1 }
 0x381   :  { %v4314_v52 = vadd.f32 %v4313_v51, %v4312_v50  ;;  %v3741_v57 = vadd.f32 %v4311_v49, %v3104_v54 }
 0x383   :  { %v3744_v62 = vadd.f32 %v4314_v52, %v3104_v54 }
 0x39d   :  { %v4331_v55 = vpop.f32.mrb[8].mxu1 }
 0x39e   :  { %v4332_v56 = vpop.f32.mrb[9].mxu1 }
 0x39f   :  { %v4333_v59 = vadd.f32 %v4332_v56, %v4331_v55  ;;  %v4334_v60 = vpop.f32.mrb[10].mxu1 }
 0x3a0   :  { %v4335_v61 = vpop.f32.mrb[11].mxu1 }
 0x3a1   :  { %v3782_v63 = vadd.f32 %v4333_v59, %v3741_v57  ;;  %v4336_v0 = vadd.f32 %v4335_v61, %v4334_v60 }
 0x3a3   :  { %3790 = vst [vmem:[#allocation10 + $0x10] sm:$0xff] %v3782_v63  ;;  %v3785_v58 = vadd.f32 %v4336_v0, %v3744_v62 }
 0x3a5   :  { %3793 = vst [vmem:[#allocation10 + $0x28] sm:$0xff] %v3785_v58 }
 0x3bd   :  { %v3697_v3 = vpop.f32.mrb[4].mxu0 }
 0x3be   :  { %v4345_v25 = vadd.f32 %v3697_v3, %v3096_v1  ;;  %v3699_v4 = vpop.f32.mrb[5].mxu0 }
 0x3bf   :  { %v4346_v5 = vadd.f32 %v3699_v4, %v3100_v2  ;;  %v3701_v6 = vpop.f32.mrb[6].mxu0 }
 0x3c0   :  { %3788 = vst [vmem:[#allocation10] sm:$0xff] %v4345_v25  ;;  %v4347_v7 = vadd.f32 %v3701_v6, %v3096_v1  ;;  %v3703_v8 = vpop.f32.mrb[7].mxu0 }
 0x3c1   :  { %3789 = vst [vmem:[#allocation10 + $0x8] sm:$0xff] %v4346_v5  ;;  %v4348_v9 = vadd.f32 %v3703_v8, %v3100_v2 }
 0x3c2   :  { %3791 = vst [vmem:[#allocation10 + $0x18] sm:$0xff] %v4347_v7 }
 0x3c3   :  { %3792 = vst [vmem:[#allocation10 + $0x20] sm:$0xff] %v4348_v9 }
 0x3c4   :  { %5207 = shalt.err (!%p5204_p8)
}
 0x3c5   :  { %s5208_s13 = scalar_lea.hbm %s5433_s5, 768 }
 0x3c6   :  { %p5209_p9 = scmp.ne.s32.totalorder %s5433_s5, %s5208_s13  ;;  %p5212_p10 = scmp.lt.u32.totalorder %s5208_s13, %s5433_s5 }
 0x3c8   :  { %p5214_p11 = pnand %p5212_p10, %p5209_p9 }
 0x3ca   :  { %5217 = shalt.err (!%p5214_p11)
}
 0x3cb   :  { %s5235_s16 = smov 384   ;;  %s5236_s4 = smov 24  }
 0x3cc   :  { %3805 = dma.vmem_to_hbm [thread:$0]  %s3800_s9, 768, %s5433_s5, [#allocation4], %s5235_s16, %s5235_s16, %s5236_s4  }
 0x3cd   :  { %5224 = dma.done.wait [#allocation4], 768  }
 0x3ce   :  { %5225 = vsyncadd [#allocation4], 4294966528 }
 0x3cf   :  { %3809 = vsyncpa [#allocation3], 1 }
 0x3d0   :  { %3810 = vsyncpa [#allocation6], 1 }
 0x3d1   :  { %3811 = vsyncpa [#allocation9], 1 }
 0x3d2   :  { %3812 = vsyncpa [#allocation4], 1 }

</bundles_post_ra>
